<compile_context>
chip_gen: v7x
topology: tpu7x:2x2x1
jax: 0.10.0
libtpu: 0.0.40
codegen_flags: <defaults>
</compile_context>

<pallas_src>
import jax
import jax.numpy as jnp
from jax.experimental import pallas as pl
from jax.experimental.pallas import tpu as pltpu


# ----------------------------------------------------------------------------
# Fused kernel, one grid step = (batch block b, vocab tile j):
#   j == 0 :  h = tanh(x @ W_enc + b)                       (Bb, T, H)
#             q = emb @ W_q                                  (Bb, U, H)
#             s = <q, h> over H, length-masked, softmax      (Bb, U, T)
#             c = p @ h ;  o = tanh(q + c) -> VMEM scratch   (Bb, U, H)
#   all j  :  logits[:, :, tile j] = o @ W_out[:, tile j]    (Bb, U, tv)
# ----------------------------------------------------------------------------
def _fused_kernel(len_ref, x_ref, emb_ref, wenc_ref, benc_ref, wq_ref, wout_ref,
                  out_ref, o_scratch):
    b_blk = pl.program_id(0)          # batch-block index
    j = pl.program_id(1)              # vocab-tile index

    Bb, T, F = x_ref.shape
    U = emb_ref.shape[1]
    H = emb_ref.shape[2]

    @pl.when(j == 0)
    def _compute_encoder_and_attention():
        # ---- Encoder: h = tanh(x @ W_enc + b) ---------------------------
        # in-kernel bf16 cast; flatten (Bb,T) so the MXU sees Bb*T rows.
        x = x_ref[...].astype(jnp.bfloat16).reshape(Bb * T, F)
        h = jnp.dot(x, wenc_ref[...], preferred_element_type=jnp.float32)
        h = jnp.tanh(h + benc_ref[...])                       # (Bb*T, H) f32
        h = h.reshape(Bb, T, H).astype(jnp.bfloat16)          # (Bb, T, H) bf16

        # ---- Query projection (flattened over batch block for MXU fill) -
        emb = emb_ref[...].reshape(Bb * U, H)                 # bf16
        q = jnp.dot(emb, wq_ref[...],
                    preferred_element_type=jnp.float32)       # (Bb*U, H) f32
        q = q.reshape(Bb, U, H)

        # ---- Scores: contract last dims of q and h (batched) ------------
        s = jnp.einsum('buh,bth->but', q.astype(jnp.bfloat16), h,
                       preferred_element_type=jnp.float32)    # (Bb, U, T) f32

        # ---- Length masking over encoder time axis ----------------------
        bidx = jax.lax.broadcasted_iota(jnp.int32, s.shape, 0)
        tidx = jax.lax.broadcasted_iota(jnp.int32, s.shape, 2)
        neg = jnp.float32(-1e30)
        for i in range(Bb):                                   # static unroll
            L = len_ref[b_blk * Bb + i]                       # SMEM scalar
            s = jnp.where((bidx == i) & (tidx >= L), neg, s)

        # ---- Softmax over T (reciprocal on the otherwise-idle EUP slot) -
        m = jnp.max(s, axis=-1, keepdims=True)
        e = jnp.exp(s - m)
        p = e * pl.reciprocal(jnp.sum(e, axis=-1, keepdims=True), approx=True)

        # ---- Context + output ------------------------------------------
        c = jnp.einsum('but,bth->buh', p.astype(jnp.bfloat16), h,
                       preferred_element_type=jnp.float32)    # (Bb, U, H) f32
        o_scratch[...] = jnp.tanh(q + c).astype(o_scratch.dtype)

    # ---- Output projection for this vocab tile (runs every j) -----------
    o = o_scratch[...].reshape(Bb * U, H)                     # bf16
    logits = jnp.dot(o, wout_ref[...],
                     preferred_element_type=jnp.float32)      # (Bb*U, tv) f32
    out_ref[...] = logits.reshape(Bb, U, -1).astype(out_ref.dtype)


def fused_forward(x, lengths, emb_targets, w_enc, b_enc, w_q, w_out, *,
                  batch_block=None, tv=128, logits_dtype=jnp.bfloat16):
    """x: (B,T,F) f32, lengths: (B,) i32, emb_targets: (B,U,H) bf16 -> (B,U,V)."""
    B, T, F = x.shape
    U, H = emb_targets.shape[1], emb_targets.shape[2]
    V = w_out.shape[1]

    if batch_block is None:
        # keep >= 2 steps on the "parallel" batch axis (v7x has 2 TensorCores)
        # while still stacking batches to raise MXU row fill when B allows it.
        batch_block = 2 if (B % 2 == 0 and B >= 4) else 1
    assert B % batch_block == 0, "B must be divisible by batch_block"
    assert V % tv == 0, "vocab size must be a multiple of the vocab tile"

    grid = (B // batch_block, V // tv)

    return pl.pallas_call(
        _fused_kernel,
        out_shape=jax.ShapeDtypeStruct((B, U, V), logits_dtype),
        grid_spec=pltpu.PrefetchScalarGridSpec(
            num_scalar_prefetch=1,                       # lengths -> SMEM
            grid=grid,
            in_specs=[
                pl.BlockSpec((batch_block, T, F), lambda b, j, lens: (b, 0, 0)),
                pl.BlockSpec((batch_block, U, H), lambda b, j, lens: (b, 0, 0)),
                pl.BlockSpec((F, H), lambda b, j, lens: (0, 0)),   # W_enc resident
                pl.BlockSpec((1, H), lambda b, j, lens: (0, 0)),   # b_enc resident
                pl.BlockSpec((H, H), lambda b, j, lens: (0, 0)),   # W_q resident
                pl.BlockSpec((H, tv), lambda b, j, lens: (0, j)),  # W_out tiled over V
            ],
            out_specs=pl.BlockSpec((batch_block, U, tv),
                                   lambda b, j, lens: (b, 0, j)),
            scratch_shapes=[pltpu.VMEM((batch_block, U, H), jnp.bfloat16)],
        ),
        compiler_params=pltpu.CompilerParams(
            dimension_semantics=("parallel", "arbitrary")),
    )(lengths, x, emb_targets, w_enc, b_enc, w_q, w_out)


# ----------------------------------------------------------------------------
# Model wrapper (parameters built deterministically in-script)
# ----------------------------------------------------------------------------
class AttModelWithText:
    def __init__(self, feat_dim, hidden_dim, vocab_size, key):
        k1, k2, k3, k4 = jax.random.split(key, 4)
        scale = 0.1
        # weights stored in bf16 ONCE at init -> no per-forward host casts
        self.w_enc = (scale * jax.random.normal(k1, (feat_dim, hidden_dim))).astype(jnp.bfloat16)
        self.b_enc = jnp.zeros((1, hidden_dim), jnp.float32)
        self.embed = (scale * jax.random.normal(k2, (vocab_size, hidden_dim))).astype(jnp.bfloat16)
        self.w_q = (scale * jax.random.normal(k3, (hidden_dim, hidden_dim))).astype(jnp.bfloat16)
        self.w_out = (scale * jax.random.normal(k4, (hidden_dim, vocab_size))).astype(jnp.bfloat16)

    def forward(self, x, lengths, targets, text=False, src_pos=None):
        # TODO(synk): text=True path (TextEncoder) is unreachable in the reference
        # module (__init__ asserts False before constructing it); only the
        # speech-encoder branch is implemented.
        if text:
            raise NotImplementedError("TextEncoder branch not defined in reference module")
        B, U = targets.shape
        V = self.w_out.shape[1]
        emb_t = jnp.take(self.embed, targets, axis=0)      # glue: embedding gather (bf16)
        logits = fused_forward(x, lengths, emb_t,
                               self.w_enc, self.b_enc, self.w_q, self.w_out)
        return logits.reshape(B, U, V)


# ----------------------------------------------------------------------------
# Pure-JAX f32 reference (same math, same bf16 master weights) for validation
# ----------------------------------------------------------------------------
def _reference_forward(model, x, lengths, targets):
    w_enc = model.w_enc.astype(jnp.float32)
    w_q = model.w_q.astype(jnp.float32)
    w_out = model.w_out.astype(jnp.float32)
    embed = model.embed.astype(jnp.float32)
    h = jnp.tanh(jnp.einsum('btf,fh->bth', x, w_enc) + model.b_enc)
    emb = jnp.take(embed, targets, axis=0)
    q = jnp.einsum('buh,hk->buk', emb, w_q)
    s = jnp.einsum('buh,bth->but', q, h)
    mask = jnp.arange(x.shape[1])[None, None, :] < lengths[:, None, None]
    s = jnp.where(mask, s, -1e30)
    p = jax.nn.softmax(s, axis=-1)
    c = jnp.einsum('but,bth->buh', p, h)
    o = jnp.tanh(q + c)
    return jnp.einsum('buh,hv->buv', o, w_out)


if __name__ == "__main__":
    # Lane-dense shapes: F = H = 128, V = 256 (tiled by 128), U = 16, B = 4
    # (batch_block=2 -> grid=(2, 2): 2 parallel batch steps for v7x megacore,
    #  and Bb*U = 32 MXU rows for the q / output projections).
    B, T, F, H, U, V = 4, 128, 128, 128, 16, 256

    key = jax.random.PRNGKey(0)
    kx, kt, kp = jax.random.split(key, 3)

    x = jax.random.normal(kx, (B, T, F), jnp.float32)                 # (B, T, F)
    lengths = jnp.array([128, 93, 64, 111], dtype=jnp.int32)          # valid frames per batch
    targets = jax.random.randint(kt, (B, U), 0, V, dtype=jnp.int32)   # (B, U)

    model = AttModelWithText(feat_dim=F, hidden_dim=H, vocab_size=V, key=kp)
    youtput = model.forward(x, lengths, targets)
    jax.block_until_ready(youtput)

    assert youtput.shape == (B, U, V), youtput.shape
    out_f32 = youtput.astype(jnp.float32)
    assert bool(jnp.all(jnp.isfinite(out_f32)))

    # loose tolerance: bf16 activations + approx reciprocal vs f32 reference
    ref = _reference_forward(model, x, lengths, targets)
    max_err = float(jnp.max(jnp.abs(out_f32 - ref)))
    assert max_err < 0.1, f"max abs error vs reference too large: {max_err}"

    print("KERNEL_OK")
</pallas_src>

<mosaic_0001>
module attributes {stable_mosaic.version = 11 : i64} {
  func.func @_fused_kernel(%arg0: i32, %arg1: i32, %arg2: memref<4xi32, #tpu.memory_space<smem>>, %arg3: memref<2x128x128xf32, #tpu.memory_space<vmem>>, %arg4: memref<2x16x128xbf16, #tpu.memory_space<vmem>>, %arg5: memref<128x128xbf16, #tpu.memory_space<vmem>>, %arg6: memref<1x128xf32, #tpu.memory_space<vmem>>, %arg7: memref<128x128xbf16, #tpu.memory_space<vmem>>, %arg8: memref<128x128xbf16, #tpu.memory_space<vmem>>, %arg9: memref<2x16x128xbf16, #tpu.memory_space<vmem>>, %arg10: memref<2x16x128xbf16, #tpu.memory_space<vmem>>) attributes {dimension_semantics = [#tpu.dimension_semantics<parallel>, #tpu.dimension_semantics<arbitrary>], iteration_bounds = array<i64: 2, 2>, scalar_prefetch = 1 : i64, scratch_operands = 1 : i64, tpu.core_type = #tpu.core_type<tc>, window_params = [{transform_indices = @transform_0, window_bounds = array<i64: 2, 128, 128>}, {transform_indices = @transform_1, window_bounds = array<i64: 2, 16, 128>}, {pipeline_mode = #tpu.pipeline_mode<synchronous>, transform_indices = @transform_2, window_bounds = array<i64: 128, 128>}, {pipeline_mode = #tpu.pipeline_mode<synchronous>, transform_indices = @transform_3, window_bounds = array<i64: 1, 128>}, {pipeline_mode = #tpu.pipeline_mode<synchronous>, transform_indices = @transform_4, window_bounds = array<i64: 128, 128>}, {transform_indices = @transform_5, window_bounds = array<i64: 128, 128>}, {transform_indices = @transform_6, window_bounds = array<i64: 2, 16, 128>}]} {
    %c0_i32 = arith.constant 0 : i32
    %0 = arith.cmpi eq, %arg1, %c0_i32 : i32
    %1 = arith.extui %0 : i1 to i32
    %c0_i32_0 = arith.constant 0 : i32
    %2 = arith.cmpi ne, %1, %c0_i32_0 : i32
    scf.if %2 {
      %c0_8 = arith.constant 0 : index
      %c0_9 = arith.constant 0 : index
      %c0_10 = arith.constant 0 : index
      %10 = vector.load %arg3[%c0_8, %c0_9, %c0_10] : memref<2x128x128xf32, #tpu.memory_space<vmem>>, vector<2x128x128xf32>
      %11 = arith.truncf %10 : vector<2x128x128xf32> to vector<2x128x128xbf16>
      %12 = vector.shape_cast %11 : vector<2x128x128xbf16> to vector<256x128xbf16>
      %c0_11 = arith.constant 0 : index
      %c0_12 = arith.constant 0 : index
      %13 = vector.load %arg5[%c0_11, %c0_12] : memref<128x128xbf16, #tpu.memory_space<vmem>>, vector<128x128xbf16>
      %cst_13 = arith.constant dense<0.000000e+00> : vector<256x128xf32>
      %14 = tpu.matmul %12, %13, %cst_13 {dimension_numbers = #tpu.dot_dimension_numbers<[1], [0], [0], [1], [0, 0, 1, 1], [], []>} : vector<256x128xbf16>, vector<128x128xbf16>, vector<256x128xf32> -> vector<256x128xf32>
      %c0_14 = arith.constant 0 : index
      %c0_15 = arith.constant 0 : index
      %15 = vector.load %arg6[%c0_14, %c0_15] : memref<1x128xf32, #tpu.memory_space<vmem>>, vector<1x128xf32>
      %16 = vector.broadcast %15 : vector<1x128xf32> to vector<256x128xf32>
      %17 = arith.addf %14, %16 : vector<256x128xf32>
      %18 = math.tanh %17 : vector<256x128xf32>
      %19 = vector.shape_cast %18 : vector<256x128xf32> to vector<2x128x128xf32>
      %20 = arith.truncf %19 : vector<2x128x128xf32> to vector<2x128x128xbf16>
      %c0_16 = arith.constant 0 : index
      %c0_17 = arith.constant 0 : index
      %c0_18 = arith.constant 0 : index
      %21 = vector.load %arg4[%c0_16, %c0_17, %c0_18] : memref<2x16x128xbf16, #tpu.memory_space<vmem>>, vector<2x16x128xbf16>
      %22 = vector.shape_cast %21 : vector<2x16x128xbf16> to vector<32x128xbf16>
      %c0_19 = arith.constant 0 : index
      %c0_20 = arith.constant 0 : index
      %23 = vector.load %arg7[%c0_19, %c0_20] : memref<128x128xbf16, #tpu.memory_space<vmem>>, vector<128x128xbf16>
      %cst_21 = arith.constant dense<0.000000e+00> : vector<32x128xf32>
      %24 = tpu.matmul %22, %23, %cst_21 {dimension_numbers = #tpu.dot_dimension_numbers<[1], [0], [0], [1], [0, 0, 1, 1], [], []>} : vector<32x128xbf16>, vector<128x128xbf16>, vector<32x128xf32> -> vector<32x128xf32>
      %25 = vector.shape_cast %24 : vector<32x128xf32> to vector<2x16x128xf32>
      %26 = arith.truncf %25 : vector<2x16x128xf32> to vector<2x16x128xbf16>
      "tpu.trace_start"() <{level = 10 : i32, message = "buh,bth->but"}> : () -> ()
      %cst_22 = arith.constant dense<0.000000e+00> : vector<2x16x128xf32>
      %27 = tpu.matmul %26, %20, %cst_22 {dimension_numbers = #tpu.dot_dimension_numbers<[2], [2], [1], [1], [0, 0, 0, 1, 1, 1], [0], [0]>} : vector<2x16x128xbf16>, vector<2x128x128xbf16>, vector<2x16x128xf32> -> vector<2x16x128xf32>
      "tpu.trace_stop"() : () -> ()
      %28 = tpu.iota {dimensions = array<i32: 0>} : vector<2x16x128xi32>
      %29 = tpu.iota {dimensions = array<i32: 2>} : vector<2x16x128xi32>
      %c2_i32 = arith.constant 2 : i32
      %30 = arith.muli %arg0, %c2_i32 : i32
      %c0_i32_23 = arith.constant 0 : i32
      %31 = arith.addi %30, %c0_i32_23 : i32
      %32 = arith.index_cast %31 : i32 to index
      %33 = memref.load %arg2[%32] : memref<4xi32, #tpu.memory_space<smem>>
      %c0_i32_24 = arith.constant 0 : i32
      %34 = vector.broadcast %c0_i32_24 : i32 to vector<2x16x128xi32>
      %35 = arith.cmpi eq, %28, %34 : vector<2x16x128xi32>
      %36 = vector.broadcast %33 : i32 to vector<2x16x128xi32>
      %37 = arith.cmpi sge, %29, %36 : vector<2x16x128xi32>
      %38 = arith.andi %35, %37 : vector<2x16x128xi1>
      %cst_25 = arith.constant -1.000000e+30 : f32
      %39 = vector.broadcast %cst_25 : f32 to vector<2x16x128xf32>
      %40 = arith.select %38, %39, %27 : vector<2x16x128xi1>, vector<2x16x128xf32>
      %c2_i32_26 = arith.constant 2 : i32
      %41 = arith.muli %arg0, %c2_i32_26 : i32
      %c1_i32 = arith.constant 1 : i32
      %42 = arith.addi %41, %c1_i32 : i32
      %43 = arith.index_cast %42 : i32 to index
      %44 = memref.load %arg2[%43] : memref<4xi32, #tpu.memory_space<smem>>
      %c1_i32_27 = arith.constant 1 : i32
      %45 = vector.broadcast %c1_i32_27 : i32 to vector<2x16x128xi32>
      %46 = arith.cmpi eq, %28, %45 : vector<2x16x128xi32>
      %47 = vector.broadcast %44 : i32 to vector<2x16x128xi32>
      %48 = arith.cmpi sge, %29, %47 : vector<2x16x128xi32>
      %49 = arith.andi %46, %48 : vector<2x16x128xi1>
      %cst_28 = arith.constant -1.000000e+30 : f32
      %50 = vector.broadcast %cst_28 : f32 to vector<2x16x128xf32>
      %51 = arith.select %49, %50, %40 : vector<2x16x128xi1>, vector<2x16x128xf32>
      %cst_29 = arith.constant dense<0xFF800000> : vector<2x16xf32>
      %52 = vector.multi_reduction <maximumf>, %51, %cst_29 [2] : vector<2x16x128xf32> to vector<2x16xf32>
      %53 = vector.shape_cast %52 : vector<2x16xf32> to vector<2x16x1xf32>
      %54 = vector.broadcast %53 : vector<2x16x1xf32> to vector<2x16x128xf32>
      %55 = arith.subf %51, %54 : vector<2x16x128xf32>
      %56 = math.exp %55 : vector<2x16x128xf32>
      %cst_30 = arith.constant dense<0.000000e+00> : vector<2x16xf32>
      %57 = vector.multi_reduction <add>, %56, %cst_30 [2] : vector<2x16x128xf32> to vector<2x16xf32>
      %58 = vector.shape_cast %57 : vector<2x16xf32> to vector<2x16x1xf32>
      %59 = tpu.reciprocal %58 {approx = true} : vector<2x16x1xf32> -> vector<2x16x1xf32>
      %60 = vector.broadcast %59 : vector<2x16x1xf32> to vector<2x16x128xf32>
      %61 = arith.mulf %56, %60 : vector<2x16x128xf32>
      %62 = arith.truncf %61 : vector<2x16x128xf32> to vector<2x16x128xbf16>
      "tpu.trace_start"() <{level = 10 : i32, message = "but,bth->buh"}> : () -> ()
      %cst_31 = arith.constant dense<0.000000e+00> : vector<2x16x128xf32>
      %63 = tpu.matmul %62, %20, %cst_31 {dimension_numbers = #tpu.dot_dimension_numbers<[2], [1], [1], [2], [0, 0, 0, 1, 1, 2], [0], [0]>} : vector<2x16x128xbf16>, vector<2x128x128xbf16>, vector<2x16x128xf32> -> vector<2x16x128xf32>
      "tpu.trace_stop"() : () -> ()
      %64 = arith.addf %25, %63 : vector<2x16x128xf32>
      %65 = math.tanh %64 : vector<2x16x128xf32>
      %66 = arith.truncf %65 : vector<2x16x128xf32> to vector<2x16x128xbf16>
      %c0_32 = arith.constant 0 : index
      %c0_33 = arith.constant 0 : index
      %c0_34 = arith.constant 0 : index
      %67 = vector.load %arg10[%c0_32, %c0_33, %c0_34] : memref<2x16x128xbf16, #tpu.memory_space<vmem>>, vector<2x16x128xbf16>
      tpu.vector_store %arg10[%c0_32, %c0_33, %c0_34], %66 {strides = array<i32>} : memref<2x16x128xbf16, #tpu.memory_space<vmem>>, vector<2x16x128xbf16>,
    } else {
    }
    %c0 = arith.constant 0 : index
    %c0_1 = arith.constant 0 : index
    %c0_2 = arith.constant 0 : index
    %3 = vector.load %arg10[%c0, %c0_1, %c0_2] : memref<2x16x128xbf16, #tpu.memory_space<vmem>>, vector<2x16x128xbf16>
    %4 = vector.shape_cast %3 : vector<2x16x128xbf16> to vector<32x128xbf16>
    %c0_3 = arith.constant 0 : index
    %c0_4 = arith.constant 0 : index
    %5 = vector.load %arg8[%c0_3, %c0_4] : memref<128x128xbf16, #tpu.memory_space<vmem>>, vector<128x128xbf16>
    %cst = arith.constant dense<0.000000e+00> : vector<32x128xf32>
    %6 = tpu.matmul %4, %5, %cst {dimension_numbers = #tpu.dot_dimension_numbers<[1], [0], [0], [1], [0, 0, 1, 1], [], []>} : vector<32x128xbf16>, vector<128x128xbf16>, vector<32x128xf32> -> vector<32x128xf32>
    %7 = vector.shape_cast %6 : vector<32x128xf32> to vector<2x16x128xf32>
    %8 = arith.truncf %7 : vector<2x16x128xf32> to vector<2x16x128xbf16>
    %c0_5 = arith.constant 0 : index
    %c0_6 = arith.constant 0 : index
    %c0_7 = arith.constant 0 : index
    %9 = vector.load %arg9[%c0_5, %c0_6, %c0_7] : memref<2x16x128xbf16, #tpu.memory_space<vmem>>, vector<2x16x128xbf16>
    tpu.vector_store %arg9[%c0_5, %c0_6, %c0_7], %8 {strides = array<i32>} : memref<2x16x128xbf16, #tpu.memory_space<vmem>>, vector<2x16x128xbf16>,
    return
  }
  func.func @transform_0(%arg0: i32, %arg1: i32, %arg2: memref<4xi32, #tpu.memory_space<smem>>) -> (i32, i32, i32) {
    %c0_i32 = arith.constant 0 : i32
    %c0_i32_0 = arith.constant 0 : i32
    %c0_i32_1 = arith.constant 0 : i32
    return %arg0, %c0_i32, %c0_i32_0 : i32, i32, i32
  }
  func.func @transform_1(%arg0: i32, %arg1: i32, %arg2: memref<4xi32, #tpu.memory_space<smem>>) -> (i32, i32, i32) {
    %c0_i32 = arith.constant 0 : i32
    %c0_i32_0 = arith.constant 0 : i32
    %c0_i32_1 = arith.constant 0 : i32
    return %arg0, %c0_i32, %c0_i32_0 : i32, i32, i32
  }
  func.func @transform_2(%arg0: i32, %arg1: i32, %arg2: memref<4xi32, #tpu.memory_space<smem>>) -> (i32, i32) {
    %c0_i32 = arith.constant 0 : i32
    %c0_i32_0 = arith.constant 0 : i32
    %c0_i32_1 = arith.constant 0 : i32
    return %c0_i32, %c0_i32_0 : i32, i32
  }
  func.func @transform_3(%arg0: i32, %arg1: i32, %arg2: memref<4xi32, #tpu.memory_space<smem>>) -> (i32, i32) {
    %c0_i32 = arith.constant 0 : i32
    %c0_i32_0 = arith.constant 0 : i32
    %c0_i32_1 = arith.constant 0 : i32
    return %c0_i32, %c0_i32_0 : i32, i32
  }
  func.func @transform_4(%arg0: i32, %arg1: i32, %arg2: memref<4xi32, #tpu.memory_space<smem>>) -> (i32, i32) {
    %c0_i32 = arith.constant 0 : i32
    %c0_i32_0 = arith.constant 0 : i32
    %c0_i32_1 = arith.constant 0 : i32
    return %c0_i32, %c0_i32_0 : i32, i32
  }
  func.func @transform_5(%arg0: i32, %arg1: i32, %arg2: memref<4xi32, #tpu.memory_space<smem>>) -> (i32, i32) {
    %c0_i32 = arith.constant 0 : i32
    %c0_i32_0 = arith.constant 0 : i32
    return %c0_i32, %arg1 : i32, i32
  }
  func.func @transform_6(%arg0: i32, %arg1: i32, %arg2: memref<4xi32, #tpu.memory_space<smem>>) -> (i32, i32, i32) {
    %c0_i32 = arith.constant 0 : i32
    %c0_i32_0 = arith.constant 0 : i32
    return %arg0, %c0_i32, %arg1 : i32, i32, i32
  }
}

</mosaic_0001>

<bundles_post_ra>
// kernel: tpu_custom_call.1
= control target key start
LH: loop header
LB: loop body
LE: loop exit
PB: predicated region body
PF: predicated region fallthrough
CT: control target
= control target key end

     0   :  { %s3052_s0 = inlined_call_operand.hbm [shape: s32[4], index: 0, kind: input, shape index: {}]   ;;  %s3053_s1 = inlined_call_operand.hbm [shape: f32[4,128,128], index: 1, kind: input, shape index: {}]   ;;  %s3054_s2 = inlined_call_operand.hbm [shape: bf16[4,16,128], index: 2, kind: input, shape index: {}]   ;;  %s3055_s3 = inlined_call_operand.hbm [shape: bf16[128,128], index: 3, kind: input, shape index: {}]   ;;  %s3056_s4 = inlined_call_operand.vmem [shape: f32[1,128], index: 4, kind: input, shape index: {}]   ;;  %s3057_s5 = inlined_call_operand.hbm [shape: bf16[128,128], index: 5, kind: input, shape index: {}]   ;;  %s3058_s6 = inlined_call_operand.hbm [shape: bf16[128,256], index: 6, kind: input, shape index: {}]   ;;  %s3059_s7 = inlined_call_operand.hbm [shape: bf16[4,16,256], index: 7, kind: output, shape index: {}]  }
   0x1   :  { %3093 = sst [smem:[#allocation32_spill]] %s3053_s1  ;;  %s2009_s26 = scalar_lea.hbm %s3052_s0, 16 }
   0x2   :  { %3094 = sst [smem:[#allocation33_spill]] %s3055_s3  ;;  %p2010_p0 = scmp.ne.s32.totalorder %s3052_s0, %s2009_s26 }
   0x3   :  { %3095 = sst [smem:[#allocation34_spill]] %s3056_s4  ;;  %p2013_p1 = scmp.lt.u32.totalorder %s2009_s26, %s3052_s0 }
   0x4   :  { %3096 = sst [smem:[#allocation35_spill]] %s3059_s7 }
   0x5   :  { %p2015_p2 = pnand %p2013_p1, %p2010_p0 }
   0x7   :  { %2018 = shalt.err (!%p2015_p2)  }
   0x8   :  { %s2331_s8 = smov [#allocation4]  }
   0x9   :  { %13 = dma.hbm_to_smem %s3052_s0, 16, %s2331_s8, [#allocation3] }
   0xa   :  { %2249 = dma.done.wait [#allocation3], 16 }
   0xb   :  { %2250 = vsyncadd [#allocation3], 4294967280 }
   0xc   :  { %15 = sfence }
   0xd   :  { %16 = vsyncpa [#allocation6], 0 }
   0xe   :  { %18 = vsyncpa [#allocation6 + $0x1], 0 }
   0xf   :  { %19 = vsyncpa [#allocation9], 0 }
  0x10   :  { %21 = vsyncpa [#allocation9 + $0x1], 0 }
  0x11   :  { %22 = vsyncpa [#allocation12], 0 }
  0x12   :  { %23 = vsyncpa [#allocation7], 0 }
  0x13   :  { %25 = vsyncpa [#allocation7 + $0x1], 0  ;;  %s2399_s11 = smov 0   ;;  %s2401_s12 = smov 0  }
  0x14   :  { %s2403_s13 = smov 0   ;;  %s2405_s14 = smov 0  }
  0x15   :  { %s2407_s15 = smov 0   ;;  %s2409_s0 = smov 0  }
  0x16   :  { %s2411_s16 = smov 0   ;;  %s2413_s17 = smov 0  }
  0x17   :  { %s2415_s18 = smov 0   ;;  %s2417_s19 = smov 0  }
  0x18   :  { %s2419_s20 = smov 0   ;;  %s2421_s21 = smov 0  }
  0x19   :  { %s2423_s22 = smov 0   ;;  %s2425_s23 = smov 0  }
  0x1a LB: > { %3097 = sst [smem:[#allocation22_spill]] %s2277_s11  ;;  %s2466_s24 = sadd.s32 4294967295, %s2329_s23   ;;  %s2329_s23 = sphi %s2425_s23, %s31_s23   ;;  %s2325_s22 = sphi %s2423_s22, %s3175_s22   ;;  %s2321_s21 = sphi %s2421_s21, %s3174_s21   ;;  %s2317_s20 = sphi %s2419_s20, %s3173_s20   ;;  %s2313_s19 = sphi %s2417_s19, %s3172_s19   ;;  %s2309_s18 = sphi %s2415_s18, %s3171_s18   ;;  %s2305_s17 = sphi %s2413_s17, %s3170_s17   ;;  %s2301_s16 = sphi %s2411_s16, %s3169_s16   ;;  %s2297_s0 = sphi %s2409_s0, %s3168_s0   ;;  %s2293_s15 = sphi %s2407_s15, %s3167_s15   ;;  %s2289_s14 = sphi %s2405_s14, %s3166_s14   ;;  %s2285_s13 = sphi %s2403_s13, %s3165_s13   ;;  %s2281_s12 = sphi %s2401_s12, %s3164_s12   ;;  %s2277_s11 = sphi %s2399_s11, %s3163_s11  }
  0x1b   : > { %3098 = sst [smem:[#allocation23_spill]] %s2281_s12  ;;  %p63_p3 = scmp.ne.s32.totalorder %s2305_s17, %s2301_s16 }
  0x1c   : > { %3099 = sst [smem:[#allocation24_spill]] %s2293_s15  ;;  %p3065_p4 = scmp.eq.s32.totalorder %s2466_s24, 0 }
  0x1d   : > { %3100 = sst [smem:[#allocation25_spill]] %s2305_s17  ;;  %p178_p5 = scmp.ne.s32.totalorder %s2293_s15, %s2289_s14 }
  0x1e   : > { %3101 = sst [smem:[#allocation26_spill]] %s2313_s19  ;;  %s1399_s25 = sadd.s32 4294967294, %s2329_s23  }
  0x1f   : > { %3102 = sst [smem:[#allocation27_spill]] %s2317_s20  ;;  %p2474_p6 = por %p3065_p4, %p63_p3 }
  0x20   : > { %p2480_p7 = por %p178_p5, %p3065_p4  ;;  %p203_p8 = scmp.ne.s32.totalorder %s2285_s13, %s2281_s12 }
  0x21   : > { %s3103_s26 = scalar_select %p2474_p6, 1, 0 }
  0x22   : > { %s3105_s27 = scalar_select %p2480_p7, 1, 0 }
  0x23   : > { %3104 = sst [smem:[#allocation28_spill]] %s3103_s26  ;;  %p204_p9 = scmp.eq.s32.totalorder %s2466_s24, 3 }
  0x24   : > { %3106 = sst [smem:[#allocation29_spill]] %s3105_s27  ;;  %p209_p10 = scmp.ne.s32.totalorder %s2281_s12, %s2277_s11 }
  0x25   : > { %p210_p11 = scmp.eq.s32.totalorder %s1399_s25, 3  ;;  %p1400_p12 = scmp.ge.s32.totalorder %s2329_s23, 1 }
  0x26   : > { %p2490_p13 = por %p204_p9, %p203_p8  ;;  %p217_p0 = scmp.lt.s32.totalorder %s2329_s23, 5 }
  0x27   : > { %p2495_p1 = por %p210_p11, %p209_p10  ;;  %s2332_s8 = smov [#allocation10]  }
  0x28   : > { %s3107_s28 = scalar_select %p2490_p13, 1, 0 }
  0x29   : > { %s3109_s29 = scalar_select %p2495_p1, 1, 0 }
  0x2a   : > { %3108 = sst [smem:[#allocation30_spill]] %s3107_s28  ;;  %p2499_p2 = pnand %p1400_p12, %p217_p0 }
  0x2b   : > { %3110 = sst [smem:[#allocation31_spill]] %s3109_s29  ;;  %s229_s9 = sshll.u32 %s2332_s8, 4  ;;  %s230_s9 = int_to_ptr.vmem [resolvable:$true] %s229_s9 }
  0x2c   : > { %s3111_s30 = scalar_select %p2499_p2, 1, 0 }
  0x2d   : > { %p1744_p3 = pneg %p2499_p2  ;;  %s3113_s3 = sld [smem:[#allocation33_spill]] }
  0x2f   : > { %p2507_p5 = pnand %p1744_p3, %p3065_p4 }
  0x31   : > { %s3112_s10 = scalar_select %p2507_p5, 1, 0 }
  0x32   : > { %p3075_p10 = pneg %p2507_p5 }
  0x33   : > { %s2019_s25 = scalar_lea.hbm %s3113_s3, 1024 }
  0x34   : > { %p2020_p9 = scmp.ne.s32.totalorder %s3113_s3, %s2019_s25  ;;  %p2026_p0 = scmp.lt.u32.totalorder %s2019_s25, %s3113_s3 }
  0x36   : > { %p2022_p11 = pnand %p3075_p10, %p2020_p9 }
  0x38   : > { %p2023_p12 = pneg %p2022_p11 }
  0x3a   : > { %p2028_p3 = pnand %p2026_p0, %p2023_p12 }
  0x3c   : > { %2031 = shalt.err (!%p2028_p3)
}
  0x3d   : > { %s2032_s28 = scalar_lea.vmem %s230_s9, 1024  ;;  %p2040_p13 = scmp.lt.s32.totalorder %s230_s9, %s230_s9 }
  0x3e   : > { %p2033_p4 = scmp.ne.s32.totalorder %s230_s9, %s2032_s28  ;;  %p2041_p7 = scmp.lt.s32.totalorder %s2032_s28, %s2032_s28 }
  0x40   : > { %p2035_p8 = pnand %p2033_p4, %p3075_p10  ;;  %p2042_p6 = por %p2041_p7, %p2040_p13 }
  0x42   : > { %p2036_p1 = pneg %p2035_p8 }
  0x44   : > { %p2043_p2 = pnand %p2042_p6, %p2036_p1 }
  0x46   : > { %2046 = shalt.err (!%p2043_p2)
}
  0x47   : > { %s3070_s11 = smov 64   ;;  %s3072_s7 = smov 4  }
  0x48   : > { %1747 = dma.hbm_to_vmem [thread:$0]  (!%p2507_p5), %s3113_s3, 1024, %s230_s9, [#allocation9], %s3070_s11, %s3070_s11, %s3072_s7  }
  0x49   : > { %p57_p4 = scmp.ne.s32.totalorder %s2309_s18, %s2305_s17  ;;  %p58_p6 = scmp.eq.s32.totalorder %s2329_s23, 0 }
  0x4a   : > { %p3077_p7 = scmp.lt.s32.totalorder %s2329_s23, 4  ;;  %s3076_s14 = sand.u32 1, %s2329_s23  }
  0x4b   : > { %p59_p13 = por %p58_p6, %p57_p4  ;;  %p3114_p1 = scmp.ne.s32.totalorder %s2297_s0, %s2293_s15 }
  0x4c   : > { %s3074_s25 = sand.u32 1, %s2309_s18   ;;  %s1461_s20 = sshll.u32 %s2325_s22, 12 }
  0x4d   : > { %p2546_p2 = por %p3114_p1, %p58_p6  ;;  %s1404_s8 = sshll.u32 %s3074_s25, 8 }
  0x4e   : > { %s3116_s1 = sld [smem:[#allocation32_spill]]  ;;  %s263_s9 = scalar_lea.vmem [#allocation5], %s1404_s8 }
  0x4f   : > { %s271_s29 = sshll.u32 %s263_s9, 4  ;;  %p2561_p8 = pnand %p3077_p7, %p59_p13  ;;  %s2565_s29 = int_to_ptr.vmem [resolvable:$true] %s271_s29 }
  0x50   : > { %s2569_s7 = scalar_lea.sflag [#allocation6], %s3076_s14 }
  0x51   : > { %s3117_s11 = scalar_select %p2561_p8, 1, 0 }
  0x52   : > { %p3088_p11 = pneg %p2561_p8 }
  0x54   : > { %s2557_s28 = scalar_lea.hbm %s3116_s1, %s1461_s20  ;;  %s2052_s8 = scalar_lea.hbm %s3116_s1, 8192 }
  0x55   : > { %s2047_s4 = scalar_lea.hbm %s2557_s28, 4096  ;;  %p2053_p3 = scmp.lt.u32.totalorder %s2557_s28, %s3116_s1 }
  0x56   : > { %p2048_p9 = scmp.ne.s32.totalorder %s2557_s28, %s2047_s4  ;;  %p2054_p4 = scmp.lt.u32.totalorder %s2052_s8, %s2047_s4 }
  0x57   : > { %p2056_p13 = scmp.lt.u32.totalorder %s2047_s4, %s2557_s28 }
  0x58   : > { %p2050_p12 = pnand %p3088_p11, %p2048_p9  ;;  %p2055_p6 = por %p2054_p4, %p2053_p3 }
  0x5a   : > { %p2051_p0 = pneg %p2050_p12  ;;  %p2057_p1 = por %p2056_p13, %p2055_p6 }
  0x5c   : > { %p2058_p10 = pnand %p2057_p1, %p2051_p0 }
  0x5e   : > { %2061 = shalt.err (!%p2058_p10)
}
  0x5f   : > { %s2062_s14 = scalar_lea.vmem %s2565_s29, 4096  ;;  %s2335_s19 = smov [#allocation5]  }
  0x60   : > { %p2063_p9 = scmp.ne.s32.totalorder %s2565_s29, %s2062_s14  ;;  %s2067_s20 = sshll.u32 %s2335_s19, 4  ;;  %s2068_s20 = int_to_ptr.vmem [resolvable:$false] %s2067_s20 }
  0x61   : > { %s2069_s25 = scalar_lea.vmem %s2068_s20, 8192  ;;  %p2070_p5 = scmp.lt.s32.totalorder %s2565_s29, %s2068_s20 }
  0x62   : > { %p2065_p12 = pnand %p2063_p9, %p3088_p11  ;;  %p2071_p3 = scmp.lt.s32.totalorder %s2069_s25, %s2062_s14 }
  0x64   : > { %p2066_p7 = pneg %p2065_p12  ;;  %p2072_p4 = por %p2071_p3, %p2070_p5 }
  0x66   : > { %p2073_p6 = pnand %p2072_p4, %p2066_p7 }
  0x68   : > { %2076 = shalt.err (!%p2073_p6)
}
  0x69   : > { %s3092_s4 = smov 128   ;;  %s2337_s8 = smov 8  }
  0x6a   : > { %1754 = dma.hbm_to_vmem [thread:$0]  (!%p2561_p8), %s2557_s28, 4096, %s2565_s29, %s2569_s7, %s3092_s4, %s3092_s4, %s2337_s8  }
  0x6b   : > { %s3118_s9 = sand.u32 1, %s2309_s18   ;;  %p3119_p5 = scmp.lt.s32.totalorder %s2329_s23, 4 }
  0x6c   : > { %s1408_s14 = sshll.u32 %s3118_s9, 4  ;;  %s2338_s1 = smov [#allocation11]  }
  0x6d   : > { %p2605_p10 = pnand %p3119_p5, %p2546_p2  ;;  %s285_s20 = scalar_lea.vmem [#allocation8], %s1408_s14 }
  0x6e   : > { %s293_s25 = sshll.u32 %s285_s20, 4  ;;  %s245_s3 = sshll.u32 %s2338_s1, 4  ;;  %s246_s3 = int_to_ptr.vmem [resolvable:$true] %s245_s3  ;;  %s2638_s25 = int_to_ptr.vmem [resolvable:$true] %s293_s25 }
  0x6f   : > { %s3120_s19 = scalar_select %p2605_p10, 1, 0 }
  0x70   : > { %s1463_s12 = sshll.u32 %s2325_s22, 8  ;;  %s2077_s26 = scalar_lea.hbm %s3057_s5, 1024 }
  0x71   : > { %p2078_p7 = scmp.ne.s32.totalorder %s3057_s5, %s2077_s26  ;;  %p3121_p0 = scmp.ne.s32.totalorder %s3112_s10, 0 }
  0x72   : > { %p2084_p9 = scmp.lt.u32.totalorder %s2077_s26, %s3057_s5 }
  0x73   : > { %p3122_p13 = pneg %p3121_p0 }
  0x75   : > { %p2080_p2 = pnand %p2078_p7, %p3122_p13 }
  0x77   : > { %p2081_p1 = pneg %p2080_p2 }
  0x79   : > { %p2086_p12 = pnand %p2084_p9, %p2081_p1 }
  0x7b   : > { %2089 = shalt.err (!%p2086_p12)
}
  0x7c   : > { %s2090_s1 = scalar_lea.vmem %s246_s3, 1024  ;;  %p3123_p4 = pmov %p3122_p13 }
  0x7d   : > { %p2091_p3 = scmp.ne.s32.totalorder %s246_s3, %s2090_s1  ;;  %p2098_p11 = scmp.lt.s32.totalorder %s246_s3, %s246_s3 }
  0x7e   : > { %p2099_p10 = scmp.lt.s32.totalorder %s2090_s1, %s2090_s1 }
  0x7f   : > { %p2093_p6 = pnand %p2091_p3, %p3123_p4 }
  0x80   : > { %p2100_p8 = por %p2099_p10, %p2098_p11 }
  0x81   : > { %p2094_p5 = pneg %p2093_p6 }
  0x83   : > { %p2101_p7 = pnand %p2100_p8, %p2094_p5 }
  0x85   : > { %2104 = shalt.err (!%p2101_p7)
}
  0x86   : > { %s3124_s15 = smov 4   ;;  %s3125_s17 = smov 64  }
  0x87   : > { %1750 = dma.hbm_to_vmem [thread:$0]  (!%p3121_p0), %s3057_s5, 1024, %s246_s3, [#allocation12], %s3125_s17, %s3125_s17, %s3124_s15  }
  0x88   : > { %s2636_s14 = scalar_lea.hbm %s3054_s2, %s1463_s12  ;;  %s3126_s10 = sand.u32 1, %s2329_s23  }
  0x89   : > { %s2642_s20 = scalar_lea.sflag [#allocation9], %s3126_s10  ;;  %s2105_s28 = scalar_lea.hbm %s2636_s14, 256 }
  0x8a   : > { %p2106_p8 = scmp.ne.s32.totalorder %s2636_s14, %s2105_s28  ;;  %p3127_p11 = scmp.ne.s32.totalorder %s3117_s11, 0 }
  0x8b   : > { %s2110_s12 = scalar_lea.hbm %s3054_s2, 512  ;;  %p2111_p2 = scmp.lt.u32.totalorder %s2636_s14, %s3054_s2 }
  0x8c   : > { %p3128_p10 = pneg %p3127_p11  ;;  %p2112_p1 = scmp.lt.u32.totalorder %s2110_s12, %s2105_s28 }
  0x8d   : > { %p2114_p12 = scmp.lt.u32.totalorder %s2105_s28, %s2636_s14 }
  0x8e   : > { %p2108_p13 = pnand %p2106_p8, %p3128_p10  ;;  %p2113_p9 = por %p2112_p1, %p2111_p2 }
  0x90   : > { %p2109_p0 = pneg %p2108_p13  ;;  %p2115_p3 = por %p2114_p12, %p2113_p9 }
  0x92   : > { %p2116_p4 = pnand %p2115_p3, %p2109_p0 }
  0x94   : > { %2119 = shalt.err (!%p2116_p4)
}
  0x95   : > { %s2120_s26 = scalar_lea.vmem %s2638_s25, 256  ;;  %p3129_p5 = pmov %p3128_p10 }
  0x96   : > { %p2121_p6 = scmp.ne.s32.totalorder %s2638_s25, %s2120_s26  ;;  %s2339_s27 = smov [#allocation8]  }
  0x97   : > { %s2125_s8 = sshll.u32 %s2339_s27, 4  ;;  %s2126_s8 = int_to_ptr.vmem [resolvable:$false] %s2125_s8 }
  0x98   : > { %p2123_p7 = pnand %p2121_p6, %p3129_p5  ;;  %s2127_s9 = scalar_lea.vmem %s2126_s8, 512 }
  0x99   : > { %p2128_p10 = scmp.lt.s32.totalorder %s2638_s25, %s2126_s8  ;;  %p2129_p13 = scmp.lt.s32.totalorder %s2127_s9, %s2120_s26 }
  0x9a   : > { %p2124_p8 = pneg %p2123_p7 }
  0x9b   : > { %p2130_p2 = por %p2129_p13, %p2128_p10 }
  0x9d   : > { %p2131_p1 = pnand %p2130_p2, %p2124_p8 }
  0x9f   : > { %2134 = shalt.err (!%p2131_p1)
}
  0xa0   : > { %1757 = dma.hbm_to_vmem [thread:$0]  (!%p3127_p11), %s2636_s14, 256, %s2638_s25, %s2642_s20, %s3125_s17, %s3125_s17, %s3124_s15  }
  0xa1   : > { %s193_s10 = sadd.s32 1, %s2285_s13  ;;  %s305_s28 = sand.u32 1, %s2297_s0  }
  0xa2   : > { %s40_s11 = sadd.s32 1, %s2321_s21  ;;  %s1412_s3 = sshll.u32 %s305_s28, 6 }
  0xa3   : > { %s43_s16 = sadd.s32 1, %s2325_s22  ;;  %p41_p0 = scmp.ge.s32.totalorder %s40_s11, 2 }
  0xa4   : > { %s50_s12 = sadd.s32 1, %s2309_s18  ;;  %s165_s1 = sadd.s32 1, %s2297_s0 }
  0xa5   : > { %s3177_s11 = smov (%p41_p0, %s40_s11), 0  ;;  %s3179_s16 = smov (!%p41_p0, %s43_s16), %s2325_s22 }
  0xa6   : > { %s162_s29 = ssub.s32 %s2321_s21, %s3177_s11  ;;  %p45_p9 = scmp.ge.s32.totalorder %s3179_s16, 2 }
  0xa7   : > { %p163_p12 = scmp.eq.s32.totalorder %s162_s29, 0  ;;  %s1413_s25 = sshll.u32 %s2321_s21, 6 }
  0xa8   : > { %s307_s14 = scalar_lea.vmem [#allocation13], %s1412_s3  ;;  %s3181_s16 = smov (%p45_p9, %s3179_s16), 0 }
  0xa9   : > { %s313_s20 = sshll.u32 %s307_s14, 4  ;;  %s47_s27 = ssub.s32 %s2325_s22, %s3181_s16  ;;  %s2695_s20 = int_to_ptr.vmem [resolvable:$true] %s313_s20 }
  0xaa   : > { %s2686_s26 = scalar_select %p163_p12, %s2297_s0, %s165_s1  }
  0xab   : > { %s2693_s28 = scalar_lea.hbm %s3058_s6, %s1413_s25  ;;  %p48_p11 = scmp.eq.s32.totalorder %s47_s27, 0 }
  0xac   : > { %s190_s4 = sor.u32 %s162_s29, %s47_s27  ;;  %s2135_s1 = scalar_lea.hbm %s2693_s28, 1024 }
  0xad   : > { %p191_p3 = scmp.eq.s32.totalorder %s190_s4, 0  ;;  %p2136_p4 = scmp.ne.s32.totalorder %s2693_s28, %s2135_s1 }
  0xae   : > { %s2698_s3 = scalar_select %p48_p11, %s2309_s18, %s50_s12  }
  0xaf   : > { %s2701_s14 = scalar_select %p191_p3, %s2285_s13, %s193_s10  }
  0xb0   : > { %p3130_p6 = scmp.ne.s32.totalorder %s3120_s19, 0  ;;  %s2140_s9 = scalar_lea.hbm %s3058_s6, 2048 }
  0xb1   : > { %p2141_p10 = scmp.lt.u32.totalorder %s2693_s28, %s3058_s6  ;;  %p2142_p13 = scmp.lt.u32.totalorder %s2140_s9, %s2135_s1 }
  0xb2   : > { %p2137_p5 = pneg %p3130_p6  ;;  %p2144_p1 = scmp.lt.u32.totalorder %s2135_s1, %s2693_s28 }
  0xb3   : > { %p2143_p2 = por %p2142_p13, %p2141_p10 }
  0xb4   : > { %p2138_p7 = pnand %p2137_p5, %p2136_p4 }
  0xb5   : > { %p2145_p0 = por %p2144_p1, %p2143_p2 }
  0xb6   : > { %p2139_p8 = pneg %p2138_p7 }
  0xb8   : > { %p2146_p9 = pnand %p2145_p0, %p2139_p8 }
  0xba   : > { %2149 = shalt.err (!%p2146_p9)
}
  0xbb   : > { %s2150_s10 = scalar_lea.vmem %s2695_s20, 1024  ;;  %s2340_s12 = smov [#allocation13]  }
  0xbc   : > { %p2151_p12 = scmp.ne.s32.totalorder %s2695_s20, %s2150_s10  ;;  %s2155_s27 = sshll.u32 %s2340_s12, 4  ;;  %s2156_s27 = int_to_ptr.vmem [resolvable:$false] %s2155_s27 }
  0xbd   : > { %s2157_s25 = scalar_lea.vmem %s2156_s27, 2048  ;;  %p2158_p4 = scmp.lt.s32.totalorder %s2695_s20, %s2156_s27 }
  0xbe   : > { %p2153_p11 = pnand %p2151_p12, %p2137_p5  ;;  %p2159_p7 = scmp.lt.s32.totalorder %s2157_s25, %s2150_s10 }
  0xc0   : > { %p2154_p3 = pneg %p2153_p11  ;;  %p2160_p10 = por %p2159_p7, %p2158_p4 }
  0xc2   : > { %p2161_p13 = pnand %p2160_p10, %p2154_p3 }
  0xc4   : > { %2164 = shalt.err (!%p2161_p13)
}
  0xc5   : > { %s3131_s1 = smov 128   ;;  %p3132_p5 = scmp.ne.s32.totalorder %s3111_s30, 0 }
  0xc6   : > { %1760 = dma.hbm_to_vmem [thread:$0]  (!%p3130_p6), %s2693_s28, 1024, %s2695_s20, %s2569_s7, %s3131_s1, %s3125_s17, %s3124_s15  }
  0xc7   : > { %325 = sbr.rel (%p3132_p5) target bundleno = 1621 (0x655), region = 44  ;;  %s3133_s8 = sld [smem:[#allocation25_spill]] (!%p3132_p5) }
  0xc8   : > { %s3134_s9 = sld [smem:[#allocation28_spill]] (!%p3132_p5)  ;;  %s327_s29 = sand.u32 (!%p3132_p5), 1, %s2466_s24  }
  0xc9   : > { %s328_s12 = scalar_lea.sflag (!%p3132_p5), [#allocation6], %s327_s29 }
  0xcd   : > { %s329_s4 = sand.u32 (!%p3132_p5), 1, %s3133_s8  }
  0xce   : > { %s1415_s10 = sshll.u32 %s329_s4, 8  ;;  %p3135_p8 = scmp.ne.s32.totalorder %s3134_s9, 0 }
  0xcf   : > { %s2736_s27 = scalar_lea.vmem [#allocation5], %s1415_s10 }
  0xd0   : > { %2252 = dma.done.wait (%p3135_p8), %s328_s12, 4096  }
  0xd1   : > { %2254 = vsyncadd (%p3135_p8), %s328_s12, 4294963200  ;;  %s2742_s19 = sshll.u32 %s329_s4, 4  ;;  %s337_s30 = scalar_lea.sflag [#allocation9], %s327_s29 }
  0xd2   : > { %s340_s7 = scalar_lea.vmem [#allocation8], %s2742_s19 }
  0xd3   : > { %2256 = dma.done.wait (%p3135_p8), %s337_s30, 256  }
  0xd4   : > { %2258 = vsyncadd (%p3135_p8), %s337_s30, 4294967040  ;;  %p3136_p6 = scmp.eq.s32.totalorder %s2466_s24, 0 }
  0xd6   : > { %2260 = dma.done.wait (%p3136_p6), [#allocation9], 1024   ;;  %p3137_p2 = pmov %p3136_p6 }
  0xd8   : > { %2262 = vsyncadd (%p3137_p2), [#allocation9], 4294966272  ;;  %p3138_p1 = pmov %p3137_p2 }
  0xda   : > { %2264 = dma.done.wait (%p3138_p1), [#allocation12], 1024   ;;  %p3139_p0 = pmov %p3138_p1 }
  0xdb   : > { %s3140_s15 = sld [smem:[#allocation24_spill]]  ;;  %s3141_s17 = sld [smem:[#allocation29_spill]] }
  0xdc   : > { %2266 = vsyncadd (%p3139_p0), [#allocation12], 4294966272 }
  0xe1   : > { %s355_s20 = sand.u32 1, %s3140_s15   ;;  %p3142_p9 = scmp.ne.s32.totalorder %s3141_s17, 0 }
  0xe2   : > { %s1419_s28 = sshll.u32 %s355_s20, 6 }
  0xe3   : > { %s2758_s25 = scalar_lea.vmem [#allocation13], %s1419_s28 }
  0xe4   : > { %2268 = dma.done.wait (%p3142_p9), %s328_s12, 1024  }
  0xe5   : > { %2270 = vsyncadd (%p3142_p9), %s328_s12, 4294966272  ;;  %s3143_s1 = sld [smem:[#allocation23_spill]]  ;;  %s3144_s24 = sld [smem:[#allocation26_spill]] }
  0xeb   : > { %s393_s8 = sand.u32 1, %s3143_s1   ;;  %p1421_p12 = scmp.ne.s32.totalorder %s3144_s24, 0 }
  0xec   : > { %s1420_s9 = sshll.u32 %s393_s8, 4  ;;  %v1895_v0 = vld [vmem:[#allocation10] sm:$0xff] (!%p1421_p12)   ;;  %v1896_v1 = vld [vmem:[#allocation10 + $0x8] sm:$0xff] (!%p1421_p12)   ;;  %v1897_v2 = vld [vmem:[#allocation10 + $0x10] sm:$0xff] (!%p1421_p12)   ;;  %vm2342_vm0 = vmmov (!%p1421_p12), 0   ;;  %s3145_s12 = sld [smem:[#allocation34_spill]] (!%p1421_p12) }
  0xed   : > { %s2767_s29 = scalar_lea.vmem [#allocation14], %s1420_s9  ;;  %403 = sbr.rel (%p1421_p12) target bundleno = 1355 (0x54b), region = 68  ;;  %1560 = vmatprep.subr.bf16.mxu0 (!%p1421_p12), %v1895_v0  ;;  %v1898_v3 = vld [vmem:[#allocation10 + $0x18] sm:$0xff] (!%p1421_p12)   ;;  %v404_v4 = vld [vmem:[%s2736_s27] sm:$0xff] (!%p1421_p12)  ;;  %v405_v5 = vld [vmem:[%s2736_s27 + $0x8] sm:$0xff] (!%p1421_p12) }
  0xee   : > { %1561 = vmatpush3.bf16.msra.mxu0 (!%p1421_p12), %v1895_v0  ;;  %v436_v6 = vpack.c.bf16 (!%p1421_p12), %v405_v5, %v404_v4  ;;  %v1899_v7 = vld [vmem:[#allocation10 + $0x20] sm:$0xff] (!%p1421_p12)   ;;  %v1900_v8 = vld [vmem:[#allocation10 + $0x28] sm:$0xff] (!%p1421_p12)   ;;  %v1901_v11 = vld [vmem:[#allocation10 + $0x30] sm:$0xff] (!%p1421_p12)  }
  0xef   : > { %1562 = vmatprep.subr.bf16.mxu0 (!%p1421_p12), %v1896_v1  ;;  %v1903_v9 = vld [vmem:[#allocation11] sm:$0xff] (!%p1421_p12)   ;;  %v1904_v10 = vld [vmem:[#allocation11 + $0x8] sm:$0xff] (!%p1421_p12)   ;;  %v1905_v12 = vld [vmem:[#allocation11 + $0x10] sm:$0xff] (!%p1421_p12)  }
  0xf0   : > { %1576 = vmatprep.mubr.bf16.mxu0 (!%p1421_p12), %v436_v6  ;;  %1608 = vmatprep.subr.bf16.mxu1 (!%p1421_p12), %v1903_v9  ;;  %v1902_v13 = vld [vmem:[#allocation10 + $0x38] sm:$0xff] (!%p1421_p12)   ;;  %v406_v15 = vld [vmem:[%s2736_s27 + $0x10] sm:$0xff] (!%p1421_p12)  ;;  %v408_v18 = vld [vmem:[%s2736_s27 + $0x20] sm:$0xff] (!%p1421_p12) }
  0xf1   : > { %1609 = vmatpush3.bf16.msra.mxu1 (!%p1421_p12), %v1903_v9  ;;  %v1906_v14 = vld [vmem:[#allocation11 + $0x18] sm:$0xff] (!%p1421_p12)   ;;  %v1911_v16 = vld [vmem:[%s340_s7] sm:$0xff] (!%p1421_p12)   ;;  %v409_v19 = vld [vmem:[%s2736_s27 + $0x28] sm:$0xff] (!%p1421_p12) }
  0xf2   : > { %1563 = vmatpush3.bf16.msra.mxu0 (!%p1421_p12), %v1896_v1  ;;  %1610 = vmatprep.subr.bf16.mxu1 (!%p1421_p12), %v1904_v10  ;;  %v407_v17 = vld [vmem:[%s2736_s27 + $0x18] sm:$0xff] (!%p1421_p12)  ;;  %v1907_v20 = vld [vmem:[#allocation11 + $0x20] sm:$0xff] (!%p1421_p12)   ;;  %v438_v22 = vpack.c.bf16 (!%p1421_p12), %v409_v19, %v408_v18  ;;  %v1908_v23 = vld [vmem:[#allocation11 + $0x28] sm:$0xff] (!%p1421_p12)  }
  0xf3   : > { %1564 = vmatprep.subr.bf16.mxu0 (!%p1421_p12), %v1897_v2  ;;  %1624 = vmatprep.mubr.bf16.mxu1 (!%p1421_p12), %v1911_v16  ;;  %v437_v21 = vpack.c.bf16 (!%p1421_p12), %v407_v17, %v406_v15  ;;  %v410_v24 = vld [vmem:[%s2736_s27 + $0x30] sm:$0xff] (!%p1421_p12)  ;;  %v411_v25 = vld [vmem:[%s2736_s27 + $0x38] sm:$0xff] (!%p1421_p12)  ;;  %v412_v26 = vld [vmem:[%s2736_s27 + $0x40] sm:$0xff] (!%p1421_p12) }
  0xf4   : > { %v413_v27 = vld [vmem:[%s2736_s27 + $0x48] sm:$0xff]  ;;  %v1909_v28 = vld [vmem:[#allocation11 + $0x30] sm:$0xff]   ;;  %v439_v29 = vpack.c.bf16 %v411_v25, %v410_v24  ;;  %v1910_v31 = vld [vmem:[#allocation11 + $0x38] sm:$0xff]  }
  0xf5   : > { %1611 = vmatpush3.bf16.msra.mxu1 %v1904_v10  ;;  %v440_v30 = vpack.c.bf16 %v413_v27, %v412_v26  ;;  %v414_v32 = vld [vmem:[%s2736_s27 + $0x50] sm:$0xff]  ;;  %v415_v33 = vld [vmem:[%s2736_s27 + $0x58] sm:$0xff]  ;;  %v416_v34 = vld [vmem:[%s2736_s27 + $0x60] sm:$0xff] }
  0xf6   : > { %1565 = vmatpush3.bf16.msra.mxu0 %v1897_v2  ;;  %1612 = vmatprep.subr.bf16.mxu1 %v1905_v12  ;;  %v417_v35 = vld [vmem:[%s2736_s27 + $0x68] sm:$0xff]  ;;  %v441_v36 = vpack.c.bf16 %v415_v33, %v414_v32  ;;  %v418_v39 = vld [vmem:[%s2736_s27 + $0x70] sm:$0xff]  ;;  %v419_v40 = vld [vmem:[%s2736_s27 + $0x78] sm:$0xff]  ;;  %v2341_v2 = vmov 0.0  }
  0xf7   : > { %1566 = vmatprep.subr.bf16.mxu0 %v1898_v3  ;;  %v1912_v37 = vld [vmem:[%s340_s7 + $0x8] sm:$0xff]   ;;  %v442_v38 = vpack.c.bf16 %v417_v35, %v416_v34  ;;  %v420_v41 = vld [vmem:[%s2736_s27 + $0x80] sm:$0xff]  ;;  %v443_v43 = vpack.c.bf16 %v419_v40, %v418_v39  ;;  %v422_v45 = vld [vmem:[%s2736_s27 + $0x90] sm:$0xff] }
  0xf8   : > { %v421_v42 = vld [vmem:[%s2736_s27 + $0x88] sm:$0xff]  ;;  %v423_v46 = vld [vmem:[%s2736_s27 + $0x98] sm:$0xff]  ;;  %v424_v47 = vld [vmem:[%s2736_s27 + $0xa0] sm:$0xff] }
  0xf9   : > { %1613 = vmatpush3.bf16.msra.mxu1 %v1905_v12  ;;  %v444_v44 = vpack.c.bf16 %v421_v42, %v420_v41  ;;  %v425_v48 = vld [vmem:[%s2736_s27 + $0xa8] sm:$0xff]  ;;  %v445_v49 = vpack.c.bf16 %v423_v46, %v422_v45  ;;  %v426_v51 = vld [vmem:[%s2736_s27 + $0xb0] sm:$0xff]  ;;  %v427_v52 = vld [vmem:[%s2736_s27 + $0xb8] sm:$0xff] }
  0xfa   : > { %1567 = vmatpush3.bf16.msra.mxu0 %v1898_v3  ;;  %1614 = vmatprep.subr.bf16.mxu1 %v1906_v14  ;;  %v446_v50 = vpack.c.bf16 %v425_v48, %v424_v47  ;;  %v428_v53 = vld [vmem:[%s2736_s27 + $0xc0] sm:$0xff]  ;;  %v429_v54 = vld [vmem:[%s2736_s27 + $0xc8] sm:$0xff]  ;;  %v447_v55 = vpack.c.bf16 %v427_v52, %v426_v51  ;;  %v430_v57 = vld [vmem:[%s2736_s27 + $0xd0] sm:$0xff] }
  0xfb   : > { %1568 = vmatprep.subr.bf16.mxu0 %v1899_v7  ;;  %v448_v56 = vpack.c.bf16 %v429_v54, %v428_v53  ;;  %v431_v58 = vld [vmem:[%s2736_s27 + $0xd8] sm:$0xff]  ;;  %v432_v59 = vld [vmem:[%s2736_s27 + $0xe0] sm:$0xff]  ;;  %v433_v60 = vld [vmem:[%s2736_s27 + $0xe8] sm:$0xff] }
  0xfc   : > { %v449_v61 = vpack.c.bf16 %v431_v58, %v430_v57  ;;  %v450_v62 = vpack.c.bf16 %v433_v60, %v432_v59  ;;  %v434_v63 = vld [vmem:[%s2736_s27 + $0xf0] sm:$0xff]  ;;  %v435_v0 = vld [vmem:[%s2736_s27 + $0xf8] sm:$0xff]  ;;  %s3146_s27 = sld [smem:[#allocation27_spill]] }
  0xfd   : > { %1615 = vmatpush3.bf16.msra.mxu1 %v1906_v14  ;;  %v451_v1 = vpack.c.bf16 %v435_v0, %v434_v63  ;;  %v2815_v3 = vld [vmem:[%s3145_s12] ss:$0 sm:$0xff] }
  0xfe   : > { %1569 = vmatpush3.bf16.msra.mxu0 %v1899_v7  ;;  %1616 = vmatprep.subr.bf16.mxu1 %v1907_v20 }
  0xff   : > { %1570 = vmatprep.subr.bf16.mxu0 %v1900_v8 }
 0x101   : > { %1617 = vmatpush3.bf16.msra.mxu1 %v1907_v20 }
 0x102   : > { %1571 = vmatpush3.bf16.msra.mxu0 %v1900_v8  ;;  %1618 = vmatprep.subr.bf16.mxu1 %v1908_v23  ;;  %s1441_s19 = sshll.u32 %s3146_s27, 1 }
 0x103   : > { %1572 = vmatprep.subr.bf16.mxu0 %v1901_v11  ;;  %s948_s30 = sld [smem:[#allocation4 + %s1441_s19]]  ;;  %s957_s7 = sadd.s32 1, %s1441_s19 }
 0x104   : > { %s958_s15 = sld [smem:[#allocation4 + %s957_s7]] }
 0x105   : > { %1619 = vmatpush3.bf16.msra.mxu1 %v1908_v23 }
 0x106   : > { %1573 = vmatpush3.bf16.msra.mxu0 %v1901_v11  ;;  %1620 = vmatprep.subr.bf16.mxu1 %v1909_v28 }
 0x107   : > { %1574 = vmatprep.subr.bf16.mxu0 %v1902_v13 }
 0x109   : > { %1621 = vmatpush3.bf16.msra.mxu1 %v1909_v28 }
 0x10a   : > { %1575 = vmatpush3.bf16.msra.mxu0 %v1902_v13  ;;  %1622 = vmatprep.subr.bf16.mxu1 %v1910_v31 }
 0x10b   : > { %1628 = vmatprep.subr.bf16.mxu0 %v2341_v2 }
 0x10d   : > { %1577 = vmatmul.mubr.bf16.vlgmr.msra.gmra.mrb[0].mxu0 %v437_v21  ;;  %1623 = vmatpush3.bf16.msra.mxu1 %v1910_v31 }
 0x10e   : > { %1580 = vmatprep.mubr.bf16.mxu0 %v438_v22  ;;  %1648 = vmatprep.subr.bf16.mxu1 %v2341_v2 }
 0x110   : > { %1625 = vmatmul.mubr.bf16.vlgmr.msra.gmra.mrb[0].mxu1 %v1912_v37 }
 0x111   : > { %1664 = vmatprep.mubr.msk.bf16.mxu1 %vm2342_vm0, %v2341_v2 }
 0x115   : > { %1581 = vmatmul.mubr.bf16.gmra.mrb[4].mxu0 %v439_v29 }
 0x116   : > { %1584 = vmatprep.mubr.bf16.mxu0 %v440_v30 }
 0x11d   : > { %1585 = vmatmul.mubr.bf16.gmra.mrb[8].mxu0 %v441_v36 }
 0x11e   : > { %1588 = vmatprep.mubr.bf16.mxu0 %v442_v38 }
 0x125   : > { %1589 = vmatmul.mubr.bf16.gmra.mrb[12].mxu0 %v443_v43 }
 0x126   : > { %1592 = vmatprep.mubr.bf16.mxu0 %v444_v44 }
 0x12d   : > { %1593 = vmatmul.mubr.bf16.gmra.mrb[16].mxu0 %v445_v49 }
 0x12e   : > { %1596 = vmatprep.mubr.bf16.mxu0 %v446_v50 }
 0x135   : > { %1597 = vmatmul.mubr.bf16.gmra.mrb[20].mxu0 %v447_v55 }
 0x136   : > { %1600 = vmatprep.mubr.bf16.mxu0 %v448_v56 }
 0x13d   : > { %1601 = vmatmul.mubr.bf16.gmra.mrb[24].mxu0 %v449_v61 }
 0x13e   : > { %1604 = vmatprep.mubr.bf16.mxu0 %v450_v62 }
 0x145   : > { %1605 = vmatmul.mubr.bf16.gmra.mrb[28].mxu0 %v451_v1 }
 0x146   : > { %1644 = vmatprep.mubr.msk.bf16.mxu0 %vm2342_vm0, %v2341_v2 }
 0x1e0   : > { %v1578_v4 = vpop.f32.mrb[0].mxu0 }
 0x1e1   : > { %v566_v5 = vadd.f32 %v1578_v4, %v2815_v3  ;;  %v557_v6 = vpop.f32.mrb[1].mxu0 }
 0x1e2   : > { %v558_v7 = vadd.f32 %v2815_v3, %v557_v6  ;;  %v1579_v8 = vpop.f32.mrb[2].mxu0 }
 0x1e3   : > { %1913 = vtanh.f32 %v566_v5  ;;  %v569_v9 = vadd.f32 %v1579_v8, %v2815_v3  ;;  %v560_v10 = vpop.f32.mrb[3].mxu0  ;;  %v2827_v26 = vpop.f32.mrb[0].mxu1 }
 0x1e4   : > { %1915 = vtanh.f32 %v558_v7  ;;  %v561_v11 = vadd.f32 %v2815_v3, %v560_v10  ;;  %v2832_v30 = vpop.f32.mrb[1].mxu1 }
 0x1e5   : > { %1917 = vtanh.f32 %v569_v9  ;;  %v2835_v33 = vpop.f32.mrb[2].mxu1 }
 0x1e6   : > { %1919 = vtanh.f32 %v561_v11  ;;  %v862_v36 = vpack.c.bf16 %v2835_v33, %v2827_v26  ;;  %v2841_v37 = vpop.f32.mrb[3].mxu1 }
 0x1e7   : > { %v861_v39 = vpack.c.bf16 %v2841_v37, %v2832_v30 }
 0x1e8   : > { %v1582_v12 = vpop.f32.mrb[4].mxu0 }
 0x1e9   : > { %v582_v13 = vadd.f32 %v1582_v12, %v2815_v3  ;;  %v573_v14 = vpop.f32.mrb[5].mxu0 }
 0x1ea   : > { %v574_v15 = vadd.f32 %v2815_v3, %v573_v14  ;;  %v1583_v16 = vpop.f32.mrb[6].mxu0 }
 0x1eb   : > { %1921 = vtanh.f32 %v582_v13  ;;  %v585_v17 = vadd.f32 %v1583_v16, %v2815_v3  ;;  %v576_v18 = vpop.f32.mrb[7].mxu0 }
 0x1ec   : > { %1923 = vtanh.f32 %v574_v15  ;;  %v577_v19 = vadd.f32 %v2815_v3, %v576_v18 }
 0x1ed   : > { %v1914_v20 = vpop.eup %1913  ;;  %1925 = vtanh.f32 %v585_v17 }
 0x1ee   : > { %v1916_v21 = vpop.eup %1915  ;;  %1927 = vtanh.f32 %v577_v19 }
 0x1ef   : > { %v1918_v22 = vpop.eup %1917 }
 0x1f0   : > { %v1920_v23 = vpop.eup %1919  ;;  %v1586_v24 = vpop.f32.mrb[8].mxu0  ;;  %v2825_v25 = vpack.c.bf16 %v1918_v22, %v1914_v20 }
 0x1f1   : > { %v598_v27 = vadd.f32 %v1586_v24, %v2815_v3  ;;  %v589_v28 = vpop.f32.mrb[9].mxu0  ;;  %v2830_v29 = vpack.c.bf16 %v1920_v23, %v1916_v21 }
 0x1f2   : > { %v590_v31 = vadd.f32 %v2815_v3, %v589_v28  ;;  %v1587_v32 = vpop.f32.mrb[10].mxu0 }
 0x1f3   : > { %1929 = vtanh.f32 %v598_v27  ;;  %v601_v34 = vadd.f32 %v1587_v32, %v2815_v3  ;;  %v592_v35 = vpop.f32.mrb[11].mxu0  ;;  %1629 = vmatpush3.bf16.xpose.msra.mxu0 %v2830_v29 }
 0x1f4   : > { %1931 = vtanh.f32 %v590_v31  ;;  %v593_v38 = vadd.f32 %v2815_v3, %v592_v35  ;;  %1630 = vmatprep.subr.bf16.mxu0 %v2341_v2 }
 0x1f5   : > { %v1922_v40 = vpop.eup %1921  ;;  %1933 = vtanh.f32 %v601_v34 }
 0x1f6   : > { %v1924_v41 = vpop.eup %1923  ;;  %1935 = vtanh.f32 %v593_v38 }
 0x1f7   : > { %v1926_v42 = vpop.eup %1925 }
 0x1f8   : > { %v1928_v43 = vpop.eup %1927  ;;  %v1590_v44 = vpop.f32.mrb[12].mxu0  ;;  %v2847_v45 = vpack.c.bf16 %v1926_v42, %v1922_v40 }
 0x1f9   : > { %v614_v46 = vadd.f32 %v1590_v44, %v2815_v3  ;;  %v605_v47 = vpop.f32.mrb[13].mxu0  ;;  %v2850_v48 = vpack.c.bf16 %v1928_v43, %v1924_v41 }
 0x1fa   : > { %v606_v49 = vadd.f32 %v2815_v3, %v605_v47  ;;  %v1591_v50 = vpop.f32.mrb[14].mxu0 }
 0x1fb   : > { %1937 = vtanh.f32 %v614_v46  ;;  %v617_v51 = vadd.f32 %v1591_v50, %v2815_v3  ;;  %v608_v52 = vpop.f32.mrb[15].mxu0  ;;  %1631 = vmatpush3.bf16.xpose.msra.mxu0 %v2825_v25 }
 0x1fc   : > { %1939 = vtanh.f32 %v606_v49  ;;  %v609_v53 = vadd.f32 %v2815_v3, %v608_v52  ;;  %1632 = vmatprep.subr.bf16.mxu0 %v2341_v2 }
 0x1fd   : > { %v1930_v54 = vpop.eup %1929  ;;  %1941 = vtanh.f32 %v617_v51 }
 0x1fe   : > { %v1932_v55 = vpop.eup %1931  ;;  %1943 = vtanh.f32 %v609_v53 }
 0x1ff   : > { %v1934_v56 = vpop.eup %1933 }
 0x200   : > { %v1936_v57 = vpop.eup %1935  ;;  %v1594_v58 = vpop.f32.mrb[16].mxu0  ;;  %v2857_v59 = vpack.c.bf16 %v1934_v56, %v1930_v54 }
 0x201   : > { %v630_v60 = vadd.f32 %v1594_v58, %v2815_v3  ;;  %v621_v61 = vpop.f32.mrb[17].mxu0  ;;  %v2860_v62 = vpack.c.bf16 %v1936_v57, %v1932_v55 }
 0x202   : > { %v622_v63 = vadd.f32 %v2815_v3, %v621_v61  ;;  %v1595_v0 = vpop.f32.mrb[18].mxu0 }
 0x203   : > { %1945 = vtanh.f32 %v630_v60  ;;  %v633_v1 = vadd.f32 %v1595_v0, %v2815_v3  ;;  %v624_v4 = vpop.f32.mrb[19].mxu0  ;;  %1633 = vmatpush3.bf16.xpose.msra.mxu0 %v2850_v48 }
 0x204   : > { %1947 = vtanh.f32 %v622_v63  ;;  %v625_v5 = vadd.f32 %v2815_v3, %v624_v4  ;;  %1634 = vmatprep.subr.bf16.mxu0 %v2341_v2 }
 0x205   : > { %v1938_v6 = vpop.eup %1937  ;;  %1949 = vtanh.f32 %v633_v1 }
 0x206   : > { %v1940_v7 = vpop.eup %1939  ;;  %1951 = vtanh.f32 %v625_v5 }
 0x207   : > { %v1942_v8 = vpop.eup %1941 }
 0x208   : > { %v1944_v9 = vpop.eup %1943  ;;  %v1598_v10 = vpop.f32.mrb[20].mxu0  ;;  %v2867_v11 = vpack.c.bf16 %v1942_v8, %v1938_v6 }
 0x209   : > { %v646_v12 = vadd.f32 %v1598_v10, %v2815_v3  ;;  %v637_v13 = vpop.f32.mrb[21].mxu0  ;;  %v2870_v14 = vpack.c.bf16 %v1944_v9, %v1940_v7  ;;  %v959_v10 = vstv %s958_s15 }
 0x20a   : > { %v638_v15 = vadd.f32 %v2815_v3, %v637_v13  ;;  %v1599_v16 = vpop.f32.mrb[22].mxu0 }
 0x20b   : > { %1635 = vmatpush3.bf16.xpose.msra.mxu0 %v2847_v45  ;;  %1953 = vtanh.f32 %v646_v12  ;;  %v649_v17 = vadd.f32 %v1599_v16, %v2815_v3  ;;  %v640_v18 = vpop.f32.mrb[23].mxu0 }
 0x20c   : > { %1955 = vtanh.f32 %v638_v15  ;;  %v641_v19 = vadd.f32 %v2815_v3, %v640_v18  ;;  %1636 = vmatprep.subr.bf16.mxu0 %v2341_v2 }
 0x20d   : > { %v1946_v20 = vpop.eup %1945  ;;  %1957 = vtanh.f32 %v649_v17 }
 0x20e   : > { %v1948_v21 = vpop.eup %1947  ;;  %1959 = vtanh.f32 %v641_v19 }
 0x20f   : > { %v1950_v22 = vpop.eup %1949 }
 0x210   : > { %v1952_v23 = vpop.eup %1951  ;;  %v2877_v24 = vpack.c.bf16 %v1950_v22, %v1946_v20  ;;  %v1602_v27 = vpop.f32.mrb[24].mxu0 }
 0x211   : > { %v2879_v28 = vpack.c.bf16 %v1952_v23, %v1948_v21  ;;  %v662_v31 = vadd.f32 %v1602_v27, %v2815_v3  ;;  %v653_v32 = vpop.f32.mrb[25].mxu0 }
 0x212   : > { %v654_v34 = vadd.f32 %v2815_v3, %v653_v32  ;;  %v1603_v35 = vpop.f32.mrb[26].mxu0 }
 0x213   : > { %1637 = vmatpush3.bf16.xpose.msra.mxu0 %v2860_v62  ;;  %1649 = vmatpush3.bf16.xpose.msra.mxu1 %v2879_v28  ;;  %1961 = vtanh.f32 %v662_v31  ;;  %v665_v38 = vadd.f32 %v1603_v35, %v2815_v3  ;;  %v656_v40 = vpop.f32.mrb[27].mxu0 }
 0x214   : > { %1638 = vmatprep.subr.bf16.mxu0 %v2341_v2  ;;  %1650 = vmatprep.subr.bf16.mxu1 %v2341_v2  ;;  %1963 = vtanh.f32 %v654_v34  ;;  %v657_v41 = vadd.f32 %v2815_v3, %v656_v40 }
 0x215   : > { %v1954_v42 = vpop.eup %1953  ;;  %1965 = vtanh.f32 %v665_v38 }
 0x216   : > { %v1956_v43 = vpop.eup %1955  ;;  %1967 = vtanh.f32 %v657_v41 }
 0x217   : > { %v1958_v44 = vpop.eup %1957 }
 0x218   : > { %v1960_v46 = vpop.eup %1959  ;;  %v2889_v47 = vpack.c.bf16 %v1958_v44, %v1954_v42  ;;  %v1606_v49 = vpop.f32.mrb[28].mxu0 }
 0x219   : > { %v2891_v50 = vpack.c.bf16 %v1960_v46, %v1956_v43  ;;  %v678_v51 = vadd.f32 %v1606_v49, %v2815_v3  ;;  %v669_v52 = vpop.f32.mrb[29].mxu0 }
 0x21a   : > { %v670_v53 = vadd.f32 %v2815_v3, %v669_v52  ;;  %v1607_v54 = vpop.f32.mrb[30].mxu0 }
 0x21b   : > { %1639 = vmatpush3.bf16.xpose.msra.mxu0 %v2857_v59  ;;  %1651 = vmatpush3.bf16.xpose.msra.mxu1 %v2877_v24  ;;  %1969 = vtanh.f32 %v678_v51  ;;  %v681_v55 = vadd.f32 %v1607_v54, %v2815_v3  ;;  %v672_v56 = vpop.f32.mrb[31].mxu0 }
 0x21c   : > { %1640 = vmatprep.subr.bf16.mxu0 %v2341_v2  ;;  %1652 = vmatprep.subr.bf16.mxu1 %v2341_v2  ;;  %1971 = vtanh.f32 %v670_v53  ;;  %v673_v57 = vadd.f32 %v2815_v3, %v672_v56 }
 0x21d   : > { %v1962_v58 = vpop.eup %1961  ;;  %1973 = vtanh.f32 %v681_v55 }
 0x21e   : > { %v1964_v60 = vpop.eup %1963  ;;  %1975 = vtanh.f32 %v673_v57 }
 0x21f   : > { %v1966_v61 = vpop.eup %1965 }
 0x220   : > { %v1968_v63 = vpop.eup %1967  ;;  %v729_v0 = vpack.c.bf16 %v1966_v61, %v1962_v58 }
 0x221   : > { %v728_v1 = vpack.c.bf16 %v1968_v63, %v1964_v60 }
 0x223   : > { %1641 = vmatpush3.bf16.xpose.msra.mxu0 %v2870_v14  ;;  %1653 = vmatpush3.bf16.xpose.msra.mxu1 %v2891_v50 }
 0x224   : > { %1642 = vmatprep.subr.bf16.mxu0 %v2341_v2  ;;  %1654 = vmatprep.subr.bf16.mxu1 %v2341_v2 }
 0x225   : > { %v1970_v4 = vpop.eup %1969 }
 0x226   : > { %v1972_v5 = vpop.eup %1971 }
 0x227   : > { %v1974_v6 = vpop.eup %1973 }
 0x228   : > { %v1976_v3 = vpop.eup %1975  ;;  %v731_v7 = vpack.c.bf16 %v1974_v6, %v1970_v4 }
 0x229   : > { %v730_v8 = vpack.c.bf16 %v1976_v3, %v1972_v5 }
 0x22b   : > { %1643 = vmatpush3.bf16.xpose.msra.mxu0 %v2867_v11  ;;  %1655 = vmatpush3.bf16.xpose.msra.mxu1 %v2889_v47 }
 0x22c   : > { %1656 = vmatprep.subr.bf16.mxu1 %v2341_v2  ;;  %1668 = vmatprep.subr.bf16.mxu0 %v2341_v2 }
 0x232   : > { %1645 = vmatmul.mubr.bf16.vlgmr.msra.gmra.mrb[32].mxu0 %v861_v39 }
 0x233   : > { %1657 = vmatpush3.bf16.xpose.msra.mxu1 %v728_v1  ;;  %1669 = vmatpush3.bf16.msra.mxu0 %v2830_v29 }
 0x234   : > { %1670 = vmatprep.subr.bf16.mxu0 %v2341_v2  ;;  %1658 = vmatprep.subr.bf16.mxu1 %v2341_v2 }
 0x235   : > { %1684 = vmatprep.mubr.msk.bf16.mxu0 %vm2342_vm0, %v2341_v2 }
 0x237   : > { %1671 = vmatpush3.bf16.msra.mxu0 %v2825_v25  ;;  %v945_v25 = vlaneseq }
 0x238   : > { %1672 = vmatprep.subr.bf16.mxu0 %v2341_v2 }
 0x239   : > { %v946_v29 = vand.u32 127, %v945_v25 }
 0x23b   : > { %1659 = vmatpush3.bf16.xpose.msra.mxu1 %v729_v0  ;;  %1673 = vmatpush3.bf16.msra.mxu0 %v2850_v48  ;;  %vm960_vm2 = vcmp.ge.s32.totalorder %v946_v29, %v959_v10 }
 0x23c   : > { %1674 = vmatprep.subr.bf16.mxu0 %v2341_v2  ;;  %1660 = vmatprep.subr.bf16.mxu1 %v2341_v2 }
 0x23f   : > { %1675 = vmatpush3.bf16.msra.mxu0 %v2847_v45 }
 0x240   : > { %1676 = vmatprep.subr.bf16.mxu0 %v2341_v2 }
 0x243   : > { %1661 = vmatpush3.bf16.xpose.msra.mxu1 %v730_v8  ;;  %1677 = vmatpush3.bf16.msra.mxu0 %v2860_v62 }
 0x244   : > { %1678 = vmatprep.subr.bf16.mxu0 %v2341_v2  ;;  %1662 = vmatprep.subr.bf16.mxu1 %v2341_v2 }
 0x247   : > { %1679 = vmatpush3.bf16.msra.mxu0 %v2857_v59 }
 0x248   : > { %1680 = vmatprep.subr.bf16.mxu0 %v2341_v2 }
 0x24b   : > { %1663 = vmatpush3.bf16.xpose.msra.mxu1 %v731_v7  ;;  %1681 = vmatpush3.bf16.msra.mxu0 %v2870_v14 }
 0x24c   : > { %1682 = vmatprep.subr.bf16.mxu0 %v2341_v2  ;;  %1688 = vmatprep.subr.bf16.mxu1 %v2341_v2 }
 0x24f   : > { %1683 = vmatpush3.bf16.msra.mxu0 %v2867_v11 }
 0x252   : > { %1665 = vmatmul.mubr.bf16.vlgmr.msra.gmra.mrb[4].mxu1 %v862_v36  ;;  %v949_v36 = vstv %s948_s30 }
 0x253   : > { %1689 = vmatpush3.bf16.msra.mxu1 %v2879_v28  ;;  %1704 = vmatprep.mubr.msk.bf16.mxu1 %vm2342_vm0, %v2341_v2  ;;  %vm950_vm1 = vcmp.ge.s32.totalorder %v946_v29, %v949_v36 }
 0x254   : > { %1690 = vmatprep.subr.bf16.mxu1 %v2341_v2 }
 0x257   : > { %1691 = vmatpush3.bf16.msra.mxu1 %v2877_v24 }
 0x258   : > { %1692 = vmatprep.subr.bf16.mxu1 %v2341_v2 }
 0x25b   : > { %1693 = vmatpush3.bf16.msra.mxu1 %v2891_v50 }
 0x25c   : > { %1694 = vmatprep.subr.bf16.mxu1 %v2341_v2 }
 0x25f   : > { %1695 = vmatpush3.bf16.msra.mxu1 %v2889_v47 }
 0x260   : > { %1696 = vmatprep.subr.bf16.mxu1 %v2341_v2 }
 0x263   : > { %1697 = vmatpush3.bf16.msra.mxu1 %v728_v1 }
 0x264   : > { %1698 = vmatprep.subr.bf16.mxu1 %v2341_v2 }
 0x267   : > { %1699 = vmatpush3.bf16.msra.mxu1 %v729_v0 }
 0x268   : > { %1700 = vmatprep.subr.bf16.mxu1 %v2341_v2 }
 0x26b   : > { %1701 = vmatpush3.bf16.msra.mxu1 %v730_v8 }
 0x26c   : > { %1702 = vmatprep.subr.bf16.mxu1 %v2341_v2 }
 0x26f   : > { %1703 = vmatpush3.bf16.msra.mxu1 %v731_v7 }
 0x305   : > { %v897_v39 = vpop.f32.mrb[32].mxu0 }
 0x306   : > { %v953_v45 = vsel %vm950_vm1, -1e+30, %v897_v39  ;;  %v1646_v48 = vpop.f32.mrb[33].mxu0 }
 0x307   : > { %967 = vmax.xlane.f32.xlu0 %v953_v45  ;;  %v900_v59 = vpop.f32.mrb[34].mxu0 }
 0x308   : > { %v954_v62 = vsel %vm950_vm1, -1e+30, %v900_v59  ;;  %v1647_v9 = vpop.f32.mrb[35].mxu0 }
 0x30b   : > { %969 = vmax.xlane.f32.xlu0 %v954_v62 }
 0x325   : > { %v938_v2 = vpop.f32.mrb[4].mxu1 }
 0x326   : > { %v1666_v11 = vpop.f32.mrb[5].mxu1  ;;  %v965_v12 = vsel %vm960_vm2, -1e+30, %v938_v2 }
 0x327   : > { %971 = vmax.xlane.f32.xlu1 %v965_v12  ;;  %v941_v13 = vpop.f32.mrb[6].mxu1 }
 0x328   : > { %v1667_v14 = vpop.f32.mrb[7].mxu1  ;;  %v966_v15 = vsel %vm960_vm2, -1e+30, %v941_v13 }
 0x32b   : > { %973 = vmax.xlane.f32.xlu1 %v966_v15 }
 0x394   : > { %v968_v16 = vpop.xlane.xlu0 %967 }
 0x395   : > { %v975_v17 = vsub.f32 %v953_v45, %v968_v16 }
 0x397   : > { %v979_v18 = vmul.f32 1.442695, %v975_v17 }
 0x398   : > { %v970_v19 = vpop.xlane.xlu0 %969 }
 0x399   : > { %1977 = vpow2.f32 %v979_v18  ;;  %v976_v20 = vsub.f32 %v954_v62, %v970_v19 }
 0x39b   : > { %v981_v21 = vmul.f32 1.442695, %v976_v20 }
 0x39d   : > { %1979 = vpow2.f32 %v981_v21 }
 0x3a3   : > { %v1978_v22 = vpop.eup %1977 }
 0x3a4   : > { %987 = vadd.xlane.f32.xlu0 %v1978_v22 }
 0x3a7   : > { %v1980_v23 = vpop.eup %1979 }
 0x3a8   : > { %989 = vadd.xlane.f32.xlu1 %v1980_v23 }
 0x3b4   : > { %v972_v24 = vpop.xlane.xlu1 %971 }
 0x3b5   : > { %v977_v27 = vsub.f32 %v965_v12, %v972_v24 }
 0x3b7   : > { %v983_v28 = vmul.f32 1.442695, %v977_v27 }
 0x3b8   : > { %v974_v31 = vpop.xlane.xlu1 %973 }
 0x3b9   : > { %1981 = vpow2.f32 %v983_v28  ;;  %v978_v32 = vsub.f32 %v966_v15, %v974_v31 }
 0x3bb   : > { %v985_v34 = vmul.f32 1.442695, %v978_v32 }
 0x3bd   : > { %1983 = vpow2.f32 %v985_v34 }
 0x3c3   : > { %v1982_v35 = vpop.eup %1981 }
 0x3c4   : > { %991 = vadd.xlane.f32.xlu0 %v1982_v35 }
 0x3c7   : > { %v1984_v38 = vpop.eup %1983 }
 0x3c8   : > { %993 = vadd.xlane.f32.xlu1 %v1984_v38 }
 0x431   : > { %v988_v40 = vpop.xlane.xlu0 %987 }
 0x432   : > { %1985 = vrcp.f32 %v988_v40 }
 0x435   : > { %v990_v41 = vpop.xlane.xlu1 %989 }
 0x436   : > { %1987 = vrcp.f32 %v990_v41 }
 0x43c   : > { %v1986_v42 = vpop.eup %1985 }
 0x43d   : > { %v999_v44 = vmul.f32 %v1986_v42, %v1978_v22 }
 0x440   : > { %v1988_v43 = vpop.eup %1987 }
 0x441   : > { %v1000_v46 = vmul.f32 %v1988_v43, %v1980_v23 }
 0x443   : > { %v1003_v47 = vpack.c.bf16 %v1000_v46, %v999_v44 }
 0x445   : > { %1685 = vmatmul.mubr.bf16.vlgmr.msra.gmra.mrb[36].mxu0 %v1003_v47 }
 0x451   : > { %v992_v49 = vpop.xlane.xlu0 %991 }
 0x452   : > { %1989 = vrcp.f32 %v992_v49 }
 0x455   : > { %v994_v50 = vpop.xlane.xlu1 %993 }
 0x456   : > { %1991 = vrcp.f32 %v994_v50 }
 0x45c   : > { %v1990_v51 = vpop.eup %1989 }
 0x45d   : > { %v1001_v53 = vmul.f32 %v1990_v51, %v1982_v35 }
 0x460   : > { %v1992_v52 = vpop.eup %1991 }
 0x461   : > { %v1002_v54 = vmul.f32 %v1992_v52, %v1984_v38 }
 0x463   : > { %v1004_v55 = vpack.c.bf16 %v1002_v54, %v1001_v53 }
 0x465   : > { %1705 = vmatmul.mubr.bf16.vlgmr.msra.gmra.mrb[8].mxu1 %v1004_v55 }
 0x518   : > { %v1039_v56 = vpop.f32.mrb[36].mxu0 }
 0x519   : > { %v1087_v57 = vadd.f32 %v1039_v56, %v2832_v30  ;;  %v1686_v58 = vpop.f32.mrb[37].mxu0 }
 0x51a   : > { %v1042_v60 = vpop.f32.mrb[38].mxu0 }
 0x51b   : > { %v1088_v61 = vadd.f32 %v1042_v60, %v2841_v37  ;;  %v1687_v63 = vpop.f32.mrb[39].mxu0  ;;  %1993 = vtanh.f32 %v1087_v57 }
 0x51d   : > { %1995 = vtanh.f32 %v1088_v61 }
 0x525   : > { %v1994_v0 = vpop.eup %1993 }
 0x527   : > { %v1996_v1 = vpop.eup %1995 }
 0x528   : > { %v1095_v4 = vpack.c.bf16 %v1996_v1, %v1994_v0 }
 0x52a   : > { %1097 = vst [vmem:[#allocation2] sm:$0xff] %v1095_v4 }
 0x538   : > { %v1080_v5 = vpop.f32.mrb[8].mxu1 }
 0x539   : > { %v1089_v6 = vadd.f32 %v2827_v26, %v1080_v5  ;;  %v1706_v3 = vpop.f32.mrb[9].mxu1 }
 0x53a   : > { %v1083_v7 = vpop.f32.mrb[10].mxu1 }
 0x53b   : > { %v1090_v8 = vadd.f32 %v2835_v33, %v1083_v7  ;;  %v1707_v25 = vpop.f32.mrb[11].mxu1  ;;  %1997 = vtanh.f32 %v1089_v6 }
 0x53d   : > { %1999 = vtanh.f32 %v1090_v8 }
 0x545   : > { %v1998_v30 = vpop.eup %1997 }
 0x547   : > { %v2000_v29 = vpop.eup %1999 }
 0x548   : > { %v1096_v37 = vpack.c.bf16 %v2000_v29, %v1998_v30 }
 0x54a   : > { %1098 = vst [vmem:[#allocation2 + $0x8] sm:$0xff] %v1096_v37 }
 0x54b PF: > { %v2001_v36 = vld [vmem:[%s2758_s25] sm:$0xff]   ;;  %v2002_v26 = vld [vmem:[%s2758_s25 + $0x8] sm:$0xff]   ;;  %v2003_v33 = vld [vmem:[%s2758_s25 + $0x10] sm:$0xff]   ;;  %s3147_s17 = sld [smem:[#allocation27_spill]]  ;;  %s3148_s20 = sld [smem:[#allocation26_spill]] }
 0x54c   : > { %1708 = vmatprep.subr.bf16.mxu0 %v2001_v36  ;;  %v2004_v39 = vld [vmem:[%s2758_s25 + $0x18] sm:$0xff]   ;;  %v1099_v45 = vld [vmem:[#allocation2] sm:$0xff]  ;;  %v2005_v48 = vld [vmem:[%s2758_s25 + $0x20] sm:$0xff]   ;;  %s3150_s24 = sld [smem:[#allocation30_spill]]  ;;  %s1250_s10 = sshll.u32 %s2767_s29, 4  ;;  %s2970_s10 = int_to_ptr.vmem [resolvable:$true] %s1250_s10 }
 0x54d   : > { %1709 = vmatpush3.bf16.msra.mxu0 %v2001_v36  ;;  %1724 = vmatprep.mubr.bf16.mxu0 %v1099_v45  ;;  %v2006_v59 = vld [vmem:[%s2758_s25 + $0x28] sm:$0xff]   ;;  %v2007_v62 = vld [vmem:[%s2758_s25 + $0x30] sm:$0xff]   ;;  %v2008_v9 = vld [vmem:[%s2758_s25 + $0x38] sm:$0xff]   ;;  %s3151_s19 = sld [smem:[#allocation35_spill]]  ;;  %s2976_s7 = scalar_lea.sflag [#allocation7], %s393_s8 }
 0x54e   : > { %1710 = vmatprep.subr.bf16.mxu0 %v2002_v26  ;;  %s2165_s15 = scalar_lea.vmem %s2970_s10, 256 }
 0x54f   : > { %p2166_p11 = scmp.ne.s32.totalorder %s2970_s10, %s2165_s15 }
 0x551   : > { %1711 = vmatpush3.bf16.msra.mxu0 %v2002_v26  ;;  %v1100_v10 = vld [vmem:[#allocation2 + $0x8] sm:$0xff]  ;;  %s1468_s1 = sshll.u32 %s3147_s17, 3  ;;  %s2343_s17 = smov [#allocation14]  }
 0x552   : > { %1712 = vmatprep.subr.bf16.mxu0 %v2003_v33  ;;  %s1247_s9 = sadd.s32 %s3148_s20, %s1468_s1  ;;  %p3153_p3 = scmp.ne.s32.totalorder %s3150_s24, 0 }
 0x553   : > { %s1457_s4 = sshll.u32 %s1247_s9, 6  ;;  %s3152_s30 = smov %s3151_s19 }
 0x554   : > { %s2968_s25 = scalar_lea.hbm %s3151_s19, %s1457_s4  ;;  %p2167_p4 = pnand %p2166_p11, %p3153_p3 }
 0x555   : > { %1713 = vmatpush3.bf16.msra.mxu0 %v2003_v33  ;;  %s2169_s20 = sshll.u32 %s2343_s17, 4  ;;  %s2170_s20 = int_to_ptr.vmem [resolvable:$false] %s2169_s20 }
 0x556   : > { %1714 = vmatprep.subr.bf16.mxu0 %v2004_v39  ;;  %p2168_p7 = pneg %p2167_p4  ;;  %s2171_s1 = scalar_lea.vmem %s2170_s20, 512 }
 0x557   : > { %p2172_p10 = scmp.lt.s32.totalorder %s2970_s10, %s2170_s20  ;;  %p2173_p13 = scmp.lt.s32.totalorder %s2171_s1, %s2165_s15 }
 0x559   : > { %1715 = vmatpush3.bf16.msra.mxu0 %v2004_v39  ;;  %p2174_p5 = por %p2173_p13, %p2172_p10 }
 0x55a   : > { %1716 = vmatprep.subr.bf16.mxu0 %v2005_v48 }
 0x55b   : > { %p2175_p8 = pnand %p2174_p5, %p2168_p7 }
 0x55d   : > { %1717 = vmatpush3.bf16.msra.mxu0 %v2005_v48 }
 0x55e   : > { %1718 = vmatprep.subr.bf16.mxu0 %v2006_v59 }
 0x561   : > { %1719 = vmatpush3.bf16.msra.mxu0 %v2006_v59 }
 0x562   : > { %1720 = vmatprep.subr.bf16.mxu0 %v2007_v62 }
 0x565   : > { %1721 = vmatpush3.bf16.msra.mxu0 %v2007_v62 }
 0x566   : > { %1722 = vmatprep.subr.bf16.mxu0 %v2008_v9 }
 0x569   : > { %1723 = vmatpush3.bf16.msra.mxu0 %v2008_v9 }
 0x56c   : > { %1725 = vmatmul.mubr.bf16.vlgmr.msra.gmra.mrb[0].mxu0 %v1100_v10 }
 0x63f   : > { %v1726_v2 = vpop.f32.mrb[0].mxu0 }
 0x640   : > { %v1199_v11 = vpop.f32.mrb[1].mxu0 }
 0x641   : > { %v1727_v12 = vpop.f32.mrb[2].mxu0 }
 0x642   : > { %v1477_v13 = vpack.c.bf16 %v1727_v12, %v1726_v2  ;;  %v1202_v14 = vpop.f32.mrb[3].mxu0 }
 0x643   : > { %v1472_v15 = vpack.c.bf16 %v1202_v14, %v1199_v11 }
 0x644   : > { %1479 = vst [vmem:[%s2767_s29 + $0x8] sm:$0xff] %v1477_v13  }
 0x645   : > { %1473 = vst [vmem:[%s2767_s29] sm:$0xff] %v1472_v15  }
 0x646   : > { %2178 = shalt.err (!%p2175_p8)
}
 0x647   : > { %s2179_s8 = scalar_lea.hbm %s2968_s25, 256  ;;  %s2183_s9 = scalar_lea.hbm %s3152_s30, 1024 }
 0x648   : > { %p2180_p6 = scmp.ne.s32.totalorder %s2968_s25, %s2179_s8  ;;  %p2184_p0 = scmp.lt.u32.totalorder %s2968_s25, %s3152_s30 }
 0x649   : > { %p2185_p9 = scmp.lt.u32.totalorder %s2183_s9, %s2179_s8  ;;  %p2187_p11 = scmp.lt.u32.totalorder %s2179_s8, %s2968_s25 }
 0x64a   : > { %p2181_p2 = pnand %p2180_p6, %p3153_p3 }
 0x64b   : > { %p2186_p12 = por %p2185_p9, %p2184_p0 }
 0x64c   : > { %p2182_p1 = pneg %p2181_p2 }
 0x64d   : > { %p2188_p4 = por %p2187_p11, %p2186_p12 }
 0x64f   : > { %p2189_p7 = pnand %p2188_p4, %p2182_p1 }
 0x651   : > { %2192 = shalt.err (!%p2189_p7)
}
 0x652   : > { %s2344_s27 = smov 64   ;;  %s2345_s19 = smov 128  }
 0x653   : > { %s2346_s15 = smov 4  }
 0x654   : > { %1742 = dma.vmem_to_hbm [thread:$0]  (%p3153_p3), %s2970_s10, 256, %s2968_s25, %s2976_s7, %s2344_s27, %s2345_s19, %s2346_s15  }
 0x655 PF: > { %s3154_s17 = sld [smem:[#allocation22_spill]]  ;;  %s3155_s20 = sld [smem:[#allocation31_spill]] }
 0x656   : > { %p1770_p10 = scmp.ge.s32.totalorder %s2329_s23, 2 }
 0x65b   : > { %s1265_s1 = sand.u32 1, %s3154_s17   ;;  %p3156_p13 = scmp.ne.s32.totalorder %s3155_s20, 0 }
 0x65c   : > { %s1266_s8 = scalar_lea.sflag [#allocation7], %s1265_s1 }
 0x65d   : > { %p1762_p5 = pnand %p1770_p10, %p3156_p13 }
 0x65f   : > { %2272 = dma.done.wait (!%p1762_p5), %s1266_s8, 256  }
 0x660   : > { %2274 = vsyncadd (!%p1762_p5), %s1266_s8, 4294967040  ;;  %s31_s23 = sadd.s32 1, %s2329_s23   ;;  %s3158_s28 = sld [smem:[#allocation23_spill]] }
 0x661   : > { %p3005_p8 = scmp.ge.s32.totalorder %s31_s23, 6   ;;  %s3159_s24 = sld [smem:[#allocation24_spill]] }
 0x662   : > { %s3160_s10 = sld [smem:[#allocation25_spill]]  ;;  %s3161_s25 = smov %s3177_s11 }
 0x663   : > { %s3162_s7 = smov %s3181_s16  ;;  %s3164_s12 = smov %s2285_s13 }
 0x664   : > { %s3165_s13 = smov %s2701_s14  ;;  %s3167_s15 = smov %s2297_s0 }
 0x665   : > { %s3168_s0 = smov %s2686_s26  ;;  %s3170_s17 = smov %s2309_s18 }
 0x666   : > { %s3163_s11 = smov %s3158_s28  ;;  %s3171_s18 = smov %s2698_s3 }
 0x667   : > { %s3166_s14 = smov %s3159_s24  ;;  %s3172_s19 = smov %s2321_s21 }
 0x668   : > { %s3169_s16 = smov %s3160_s10  ;;  %s3173_s20 = smov %s2325_s22 }
 0x669   : > { %s3174_s21 = smov %s3161_s25  ;;  %s3175_s22 = smov %s3162_s7 }
 0x66a   :  { %30 = sbr.rel (!%p3005_p8) target bundleno = 26 (0x1a), region = 125 }
 0x671   :  { %1271 = vsyncpa [#allocation6], 1 }
 0x672   :  { %1273 = vsyncpa [#allocation6 + $0x1], 1 }
 0x673   :  { %1274 = vsyncpa [#allocation9], 1 }
 0x674   :  { %1276 = vsyncpa [#allocation9 + $0x1], 1 }
 0x675   :  { %1277 = vsyncpa [#allocation12], 1 }
 0x676   :  { %1278 = vsyncpa [#allocation7], 1 }
 0x677   :  { %1280 = vsyncpa [#allocation7 + $0x1], 1 }

</bundles_post_ra>
